<compile_context>
chip_gen: v7x
topology: tpu7x:2x2x1
jax: 0.10.0
libtpu: 0.0.40
codegen_flags: <defaults>
</compile_context>

<pallas_src>
from math import log

import jax
import jax.numpy as jnp
from jax.experimental import pallas as pl
from jax.experimental.pallas import tpu as pltpu

# ---------------- config (mirrors the torch conf dict) ----------------
IN_SIZE = 16
HIDDENS = (32, 32)
OUT_SIZE = 8
DT = 1e-3
INIT_TAU = 0.5
MIN_TAU = 0.1
V_TH = 1.0
V_REST = 0.0
T_STEPS = 8
BATCH = 2


def snn_kernel(s_ref,                       # (T*B, IN)  bf16  -- whole spike train, time-major
               w1_ref, b1_ref, tw1_ref,     # layer 1: (IN, H1), (1, H1), (1, H1)   f32
               w2_ref, b2_ref, tw2_ref,     # layer 2: (H1, H2), (1, H2), (1, H2)   f32
               w3_ref, b3_ref, tw3_ref,     # output : (H2, OUT), (1, OUT), (1, OUT) f32
               out_ref):                    # (B, T*2*OUT) f32 — [spk_t | v_t] per timestep
    B = out_ref.shape[0]
    TB = s_ref.shape[0]
    T = TB // B
    h1 = w1_ref.shape[1]
    h2 = w2_ref.shape[1]
    out = w3_ref.shape[1]

    # ---- hoisted per-layer constants (computed ONCE, outside the time loop) ----
    inv_tau1 = DT / (MIN_TAU + jax.nn.sigmoid(tw1_ref[...]))   # (1, H1)
    inv_tau2 = DT / (MIN_TAU + jax.nn.sigmoid(tw2_ref[...]))   # (1, H2)
    inv_tau3 = DT / (MIN_TAU + jax.nn.sigmoid(tw3_ref[...]))   # (1, OUT)

    # decay pre-broadcast to (B, H) so the unrolled loop never re-emits broadcast_in_dim
    decay1 = jnp.broadcast_to(1.0 - inv_tau1, (B, h1))
    decay2 = jnp.broadcast_to(1.0 - inv_tau2, (B, h2))
    decay3 = jnp.broadcast_to(1.0 - inv_tau3, (B, out))

    # fold dt/tau into the weights / biases:  v <- v*decay + spk @ w_eff + b_eff
    w1_eff = (w1_ref[...] * inv_tau1).astype(jnp.bfloat16)
    w2_eff = (w2_ref[...] * inv_tau2).astype(jnp.bfloat16)
    w3_eff = (w3_ref[...] * inv_tau3).astype(jnp.bfloat16)
    b1_eff = inv_tau1 * (b1_ref[...] + V_REST)                       # (1, H1)
    b2_eff = jnp.broadcast_to(inv_tau2 * (b2_ref[...] + V_REST), (B, h2))
    b3_eff = jnp.broadcast_to(inv_tau3 * (b3_ref[...] + V_REST), (B, out))

    # ---- layer-1 scaled currents for ALL timesteps in one bf16 matmul ----
    cur1_all = jnp.dot(s_ref[...], w1_eff,
                       preferred_element_type=jnp.float32) + b1_eff   # (T*B, H1) f32

    # ---- membrane state carried in vregs across the (unrolled) time loop ----
    v1 = jnp.zeros((B, h1), jnp.float32)
    v2 = jnp.zeros((B, h2), jnp.float32)
    v3 = jnp.zeros((B, out), jnp.float32)

    # TODO(synk): for large T (>~32) switch this static unroll to lax.fori_loop to bound
    # vreg pressure; at T=8 the full unroll is cheapest.
    for t in range(T):
        # --- Linear(IN -> H1) (precomputed, pre-scaled) + LIF + Dropout(identity) ---
        v1 = v1 * decay1 + cur1_all[t * B:(t + 1) * B, :]
        fired1 = v1 >= V_TH
        spk1 = fired1.astype(jnp.bfloat16)
        v1 = jnp.where(fired1, V_REST, v1)                 # reset-mechanism == "zero"

        # --- Linear(H1 -> H2) + LIF + Dropout(identity) ---
        v2 = v2 * decay2 + jnp.dot(spk1, w2_eff,
                                   preferred_element_type=jnp.float32) + b2_eff
        fired2 = v2 >= V_TH
        spk2 = fired2.astype(jnp.bfloat16)
        v2 = jnp.where(fired2, V_REST, v2)

        # --- Linear(H2 -> OUT) + output LIF (returns spike and pre-reset membrane) ---
        v3 = v3 * decay3 + jnp.dot(spk2, w3_eff,
                                   preferred_element_type=jnp.float32) + b3_eff
        fired3 = v3 >= V_TH

        # per-step static-slice stores into the single lane-dense output slab
        base = t * 2 * out
        out_ref[:, base:base + out] = fired3.astype(jnp.float32)   # spikes
        out_ref[:, base + out:base + 2 * out] = v3                 # membrane before reset
        v3 = jnp.where(fired3, V_REST, v3)                         # reset-outmem=True


def snn_forward(s, params):
    """s: (T, B, IN) float32.  Returns (out_s, [], out_v) like output-membrane=True."""
    T, B, in_size = s.shape
    (w1, b1, tw1), (w2, b2, tw2), (w3, b3, tw3) = params
    out = OUT_SIZE

    # Flatten time into sublanes (free XLA reshape) and cast the binary spike train to
    # bf16 (lossless) so layer 1 is a single bf16 MXU matmul over all timesteps.
    s2d = s.reshape(T * B, in_size).astype(jnp.bfloat16)

    vmem = pl.BlockSpec(memory_space=pltpu.MemorySpace.VMEM)

    # Single lane-dense output: (B, T*2*OUT) -> last dim = 128 at these sizes.
    slab = pl.pallas_call(
        snn_kernel,
        out_shape=jax.ShapeDtypeStruct((B, T * 2 * out), jnp.float32),
        in_specs=[vmem] * 10,
        out_specs=vmem,
    )(s2d, w1, b1, tw1, w2, b2, tw2, w3, b3, tw3)

    slab = slab.reshape(B, T, 2, out).transpose(1, 0, 2, 3)   # (T, B, 2, OUT) — free in XLA
    out_s = slab[:, :, 0, :]
    out_v = slab[:, :, 1, :]
    return out_s, [], out_v


def init_params(key):
    """Deterministic parameter init (torch.nn.Linear-style uniform; tau-w from init_tau)."""
    sizes = [(IN_SIZE, HIDDENS[0]), (HIDDENS[0], HIDDENS[1]), (HIDDENS[1], OUT_SIZE)]
    tau_w_init = -log(1.0 / (INIT_TAU - MIN_TAU) - 1.0)   # sigmoid(w) = init_tau - min_tau
    params = []
    for (fan_in, fan_out) in sizes:
        key, kw, kb = jax.random.split(key, 3)
        bound = 1.0 / (fan_in ** 0.5)
        w = jax.random.uniform(kw, (fan_in, fan_out), jnp.float32, -bound, bound)
        b = jax.random.uniform(kb, (1, fan_out), jnp.float32, -bound, bound)
        tw = jnp.full((1, fan_out), tau_w_init, jnp.float32)
        params.append((w, b, tw))
    return params


if __name__ == "__main__":
    key = jax.random.PRNGKey(0)
    key, k_in = jax.random.split(key)
    params = init_params(key)

    # Poisson-like binary spike train input [T, B, IN]
    s = (jax.random.uniform(k_in, (T_STEPS, BATCH, IN_SIZE)) < 0.5).astype(jnp.float32)

    out_s, _, out_v = snn_forward(s, params)
    jax.block_until_ready((out_s, out_v))

    assert out_s.shape == (T_STEPS, BATCH, OUT_SIZE)
    assert out_v.shape == (T_STEPS, BATCH, OUT_SIZE)
    print("KERNEL_OK")
</pallas_src>

<mosaic_0001>
module attributes {stable_mosaic.version = 11 : i64} {
  func.func @snn_kernel(%arg0: memref<16x16xbf16, #tpu.memory_space<vmem>>, %arg1: memref<16x32xf32, #tpu.memory_space<vmem>>, %arg2: memref<1x32xf32, #tpu.memory_space<vmem>>, %arg3: memref<1x32xf32, #tpu.memory_space<vmem>>, %arg4: memref<32x32xf32, #tpu.memory_space<vmem>>, %arg5: memref<1x32xf32, #tpu.memory_space<vmem>>, %arg6: memref<1x32xf32, #tpu.memory_space<vmem>>, %arg7: memref<32x8xf32, #tpu.memory_space<vmem>>, %arg8: memref<1x8xf32, #tpu.memory_space<vmem>>, %arg9: memref<1x8xf32, #tpu.memory_space<vmem>>, %arg10: memref<2x128xf32, #tpu.memory_space<vmem>>) attributes {dimension_semantics = [], scalar_prefetch = 0 : i64, scratch_operands = 0 : i64, tpu.core_type = #tpu.core_type<tc>} {
    %c0 = arith.constant 0 : index
    %c0_0 = arith.constant 0 : index
    %0 = vector.load %arg3[%c0, %c0_0] : memref<1x32xf32, #tpu.memory_space<vmem>>, vector<1x32xf32>
    %1 = arith.negf %0 : vector<1x32xf32>
    %2 = math.exp %1 : vector<1x32xf32>
    %cst = arith.constant 1.000000e+00 : f32
    %3 = vector.broadcast %cst : f32 to vector<1x32xf32>
    %4 = arith.addf %3, %2 : vector<1x32xf32>
    %5 = arith.divf %3, %4 : vector<1x32xf32>
    %cst_1 = arith.constant 1.000000e-01 : f32
    %6 = vector.broadcast %cst_1 : f32 to vector<1x32xf32>
    %7 = arith.addf %6, %5 : vector<1x32xf32>
    %cst_2 = arith.constant 1.000000e-03 : f32
    %8 = vector.broadcast %cst_2 : f32 to vector<1x32xf32>
    %9 = arith.divf %8, %7 : vector<1x32xf32>
    %c0_3 = arith.constant 0 : index
    %c0_4 = arith.constant 0 : index
    %10 = vector.load %arg6[%c0_3, %c0_4] : memref<1x32xf32, #tpu.memory_space<vmem>>, vector<1x32xf32>
    %11 = arith.negf %10 : vector<1x32xf32>
    %12 = math.exp %11 : vector<1x32xf32>
    %cst_5 = arith.constant 1.000000e+00 : f32
    %13 = vector.broadcast %cst_5 : f32 to vector<1x32xf32>
    %14 = arith.addf %13, %12 : vector<1x32xf32>
    %15 = arith.divf %13, %14 : vector<1x32xf32>
    %cst_6 = arith.constant 1.000000e-01 : f32
    %16 = vector.broadcast %cst_6 : f32 to vector<1x32xf32>
    %17 = arith.addf %16, %15 : vector<1x32xf32>
    %cst_7 = arith.constant 1.000000e-03 : f32
    %18 = vector.broadcast %cst_7 : f32 to vector<1x32xf32>
    %19 = arith.divf %18, %17 : vector<1x32xf32>
    %c0_8 = arith.constant 0 : index
    %c0_9 = arith.constant 0 : index
    %20 = vector.load %arg9[%c0_8, %c0_9] : memref<1x8xf32, #tpu.memory_space<vmem>>, vector<1x8xf32>
    %21 = arith.negf %20 : vector<1x8xf32>
    %22 = math.exp %21 : vector<1x8xf32>
    %cst_10 = arith.constant 1.000000e+00 : f32
    %23 = vector.broadcast %cst_10 : f32 to vector<1x8xf32>
    %24 = arith.addf %23, %22 : vector<1x8xf32>
    %25 = arith.divf %23, %24 : vector<1x8xf32>
    %cst_11 = arith.constant 1.000000e-01 : f32
    %26 = vector.broadcast %cst_11 : f32 to vector<1x8xf32>
    %27 = arith.addf %26, %25 : vector<1x8xf32>
    %cst_12 = arith.constant 1.000000e-03 : f32
    %28 = vector.broadcast %cst_12 : f32 to vector<1x8xf32>
    %29 = arith.divf %28, %27 : vector<1x8xf32>
    %cst_13 = arith.constant 1.000000e+00 : f32
    %30 = vector.broadcast %cst_13 : f32 to vector<1x32xf32>
    %31 = arith.subf %30, %9 : vector<1x32xf32>
    %32 = vector.shape_cast %31 : vector<1x32xf32> to vector<1x32xf32>
    %33 = vector.broadcast %32 : vector<1x32xf32> to vector<2x32xf32>
    %cst_14 = arith.constant 1.000000e+00 : f32
    %34 = vector.broadcast %cst_14 : f32 to vector<1x32xf32>
    %35 = arith.subf %34, %19 : vector<1x32xf32>
    %36 = vector.shape_cast %35 : vector<1x32xf32> to vector<1x32xf32>
    %37 = vector.broadcast %36 : vector<1x32xf32> to vector<2x32xf32>
    %cst_15 = arith.constant 1.000000e+00 : f32
    %38 = vector.broadcast %cst_15 : f32 to vector<1x8xf32>
    %39 = arith.subf %38, %29 : vector<1x8xf32>
    %40 = vector.shape_cast %39 : vector<1x8xf32> to vector<1x8xf32>
    %41 = vector.broadcast %40 : vector<1x8xf32> to vector<2x8xf32>
    %c0_16 = arith.constant 0 : index
    %c0_17 = arith.constant 0 : index
    %42 = vector.load %arg1[%c0_16, %c0_17] : memref<16x32xf32, #tpu.memory_space<vmem>>, vector<16x32xf32>
    %43 = vector.broadcast %9 : vector<1x32xf32> to vector<16x32xf32>
    %44 = arith.mulf %42, %43 : vector<16x32xf32>
    %45 = arith.truncf %44 : vector<16x32xf32> to vector<16x32xbf16>
    %c0_18 = arith.constant 0 : index
    %c0_19 = arith.constant 0 : index
    %46 = vector.load %arg4[%c0_18, %c0_19] : memref<32x32xf32, #tpu.memory_space<vmem>>, vector<32x32xf32>
    %47 = vector.broadcast %19 : vector<1x32xf32> to vector<32x32xf32>
    %48 = arith.mulf %46, %47 : vector<32x32xf32>
    %49 = arith.truncf %48 : vector<32x32xf32> to vector<32x32xbf16>
    %c0_20 = arith.constant 0 : index
    %c0_21 = arith.constant 0 : index
    %50 = vector.load %arg7[%c0_20, %c0_21] : memref<32x8xf32, #tpu.memory_space<vmem>>, vector<32x8xf32>
    %51 = vector.broadcast %29 : vector<1x8xf32> to vector<32x8xf32>
    %52 = arith.mulf %50, %51 : vector<32x8xf32>
    %53 = arith.truncf %52 : vector<32x8xf32> to vector<32x8xbf16>
    %c0_22 = arith.constant 0 : index
    %c0_23 = arith.constant 0 : index
    %54 = vector.load %arg2[%c0_22, %c0_23] : memref<1x32xf32, #tpu.memory_space<vmem>>, vector<1x32xf32>
    %cst_24 = arith.constant 0.000000e+00 : f32
    %55 = vector.broadcast %cst_24 : f32 to vector<1x32xf32>
    %56 = arith.addf %54, %55 : vector<1x32xf32>
    %57 = arith.mulf %9, %56 : vector<1x32xf32>
    %c0_25 = arith.constant 0 : index
    %c0_26 = arith.constant 0 : index
    %58 = vector.load %arg5[%c0_25, %c0_26] : memref<1x32xf32, #tpu.memory_space<vmem>>, vector<1x32xf32>
    %cst_27 = arith.constant 0.000000e+00 : f32
    %59 = vector.broadcast %cst_27 : f32 to vector<1x32xf32>
    %60 = arith.addf %58, %59 : vector<1x32xf32>
    %61 = arith.mulf %19, %60 : vector<1x32xf32>
    %62 = vector.shape_cast %61 : vector<1x32xf32> to vector<1x32xf32>
    %63 = vector.broadcast %62 : vector<1x32xf32> to vector<2x32xf32>
    %c0_28 = arith.constant 0 : index
    %c0_29 = arith.constant 0 : index
    %64 = vector.load %arg8[%c0_28, %c0_29] : memref<1x8xf32, #tpu.memory_space<vmem>>, vector<1x8xf32>
    %cst_30 = arith.constant 0.000000e+00 : f32
    %65 = vector.broadcast %cst_30 : f32 to vector<1x8xf32>
    %66 = arith.addf %64, %65 : vector<1x8xf32>
    %67 = arith.mulf %29, %66 : vector<1x8xf32>
    %68 = vector.shape_cast %67 : vector<1x8xf32> to vector<1x8xf32>
    %69 = vector.broadcast %68 : vector<1x8xf32> to vector<2x8xf32>
    %c0_31 = arith.constant 0 : index
    %c0_32 = arith.constant 0 : index
    %70 = vector.load %arg0[%c0_31, %c0_32] : memref<16x16xbf16, #tpu.memory_space<vmem>>, vector<16x16xbf16>
    %cst_33 = arith.constant dense<0.000000e+00> : vector<16x32xf32>
    %71 = tpu.matmul %70, %45, %cst_33 {dimension_numbers = #tpu.dot_dimension_numbers<[1], [0], [0], [1], [0, 0, 1, 1], [], []>} : vector<16x16xbf16>, vector<16x32xbf16>, vector<16x32xf32> -> vector<16x32xf32>
    %72 = vector.broadcast %57 : vector<1x32xf32> to vector<16x32xf32>
    %73 = arith.addf %71, %72 : vector<16x32xf32>
    %cst_34 = arith.constant 0.000000e+00 : f32
    %74 = vector.broadcast %cst_34 : f32 to vector<2x32xf32>
    %cst_35 = arith.constant 0.000000e+00 : f32
    %75 = vector.broadcast %cst_35 : f32 to vector<2x32xf32>
    %cst_36 = arith.constant 0.000000e+00 : f32
    %76 = vector.broadcast %cst_36 : f32 to vector<2x8xf32>
    %77 = arith.mulf %74, %33 : vector<2x32xf32>
    %78 = vector.extract_strided_slice %73 {offsets = [0, 0], sizes = [2, 32], strides = [1, 1]} : vector<16x32xf32> to vector<2x32xf32>
    %79 = arith.addf %77, %78 : vector<2x32xf32>
    %cst_37 = arith.constant 1.000000e+00 : f32
    %80 = vector.broadcast %cst_37 : f32 to vector<2x32xf32>
    %81 = arith.cmpf oge, %79, %80 : vector<2x32xf32>
    %82 = arith.extui %81 : vector<2x32xi1> to vector<2x32xi32>
    %83 = arith.sitofp %82 : vector<2x32xi32> to vector<2x32xf32>
    %84 = arith.truncf %83 : vector<2x32xf32> to vector<2x32xbf16>
    %cst_38 = arith.constant 0.000000e+00 : f32
    %85 = vector.broadcast %cst_38 : f32 to vector<2x32xf32>
    %86 = arith.select %81, %85, %79 : vector<2x32xi1>, vector<2x32xf32>
    %87 = arith.mulf %75, %37 : vector<2x32xf32>
    %cst_39 = arith.constant dense<0.000000e+00> : vector<2x32xf32>
    %88 = tpu.matmul %84, %49, %cst_39 {dimension_numbers = #tpu.dot_dimension_numbers<[1], [0], [0], [1], [0, 0, 1, 1], [], []>} : vector<2x32xbf16>, vector<32x32xbf16>, vector<2x32xf32> -> vector<2x32xf32>
    %89 = arith.addf %87, %88 : vector<2x32xf32>
    %90 = arith.addf %89, %63 : vector<2x32xf32>
    %cst_40 = arith.constant 1.000000e+00 : f32
    %91 = vector.broadcast %cst_40 : f32 to vector<2x32xf32>
    %92 = arith.cmpf oge, %90, %91 : vector<2x32xf32>
    %93 = arith.extui %92 : vector<2x32xi1> to vector<2x32xi32>
    %94 = arith.sitofp %93 : vector<2x32xi32> to vector<2x32xf32>
    %95 = arith.truncf %94 : vector<2x32xf32> to vector<2x32xbf16>
    %cst_41 = arith.constant 0.000000e+00 : f32
    %96 = vector.broadcast %cst_41 : f32 to vector<2x32xf32>
    %97 = arith.select %92, %96, %90 : vector<2x32xi1>, vector<2x32xf32>
    %98 = arith.mulf %76, %41 : vector<2x8xf32>
    %cst_42 = arith.constant dense<0.000000e+00> : vector<2x8xf32>
    %99 = tpu.matmul %95, %53, %cst_42 {dimension_numbers = #tpu.dot_dimension_numbers<[1], [0], [0], [1], [0, 0, 1, 1], [], []>} : vector<2x32xbf16>, vector<32x8xbf16>, vector<2x8xf32> -> vector<2x8xf32>
    %100 = arith.addf %98, %99 : vector<2x8xf32>
    %101 = arith.addf %100, %69 : vector<2x8xf32>
    %cst_43 = arith.constant 1.000000e+00 : f32
    %102 = vector.broadcast %cst_43 : f32 to vector<2x8xf32>
    %103 = arith.cmpf oge, %101, %102 : vector<2x8xf32>
    %104 = arith.extui %103 : vector<2x8xi1> to vector<2x8xi32>
    %105 = arith.sitofp %104 : vector<2x8xi32> to vector<2x8xf32>
    %c0_44 = arith.constant 0 : index
    %c0_45 = arith.constant 0 : index
    %106 = vector.load %arg10[%c0_44, %c0_45] : memref<2x128xf32, #tpu.memory_space<vmem>>, vector<2x8xf32>
    tpu.vector_store %arg10[%c0_44, %c0_45], %105 {strides = array<i32>} : memref<2x128xf32, #tpu.memory_space<vmem>>, vector<2x8xf32>,
    %c0_46 = arith.constant 0 : index
    %c8 = arith.constant 8 : index
    %107 = vector.load %arg10[%c0_46, %c8] : memref<2x128xf32, #tpu.memory_space<vmem>>, vector<2x8xf32>
    tpu.vector_store %arg10[%c0_46, %c8], %101 {strides = array<i32>} : memref<2x128xf32, #tpu.memory_space<vmem>>, vector<2x8xf32>,
    %cst_47 = arith.constant 0.000000e+00 : f32
    %108 = vector.broadcast %cst_47 : f32 to vector<2x8xf32>
    %109 = arith.select %103, %108, %101 : vector<2x8xi1>, vector<2x8xf32>
    %110 = arith.mulf %86, %33 : vector<2x32xf32>
    %111 = vector.extract_strided_slice %73 {offsets = [2, 0], sizes = [2, 32], strides = [1, 1]} : vector<16x32xf32> to vector<2x32xf32>
    %112 = arith.addf %110, %111 : vector<2x32xf32>
    %cst_48 = arith.constant 1.000000e+00 : f32
    %113 = vector.broadcast %cst_48 : f32 to vector<2x32xf32>
    %114 = arith.cmpf oge, %112, %113 : vector<2x32xf32>
    %115 = arith.extui %114 : vector<2x32xi1> to vector<2x32xi32>
    %116 = arith.sitofp %115 : vector<2x32xi32> to vector<2x32xf32>
    %117 = arith.truncf %116 : vector<2x32xf32> to vector<2x32xbf16>
    %cst_49 = arith.constant 0.000000e+00 : f32
    %118 = vector.broadcast %cst_49 : f32 to vector<2x32xf32>
    %119 = arith.select %114, %118, %112 : vector<2x32xi1>, vector<2x32xf32>
    %120 = arith.mulf %97, %37 : vector<2x32xf32>
    %cst_50 = arith.constant dense<0.000000e+00> : vector<2x32xf32>
    %121 = tpu.matmul %117, %49, %cst_50 {dimension_numbers = #tpu.dot_dimension_numbers<[1], [0], [0], [1], [0, 0, 1, 1], [], []>} : vector<2x32xbf16>, vector<32x32xbf16>, vector<2x32xf32> -> vector<2x32xf32>
    %122 = arith.addf %120, %121 : vector<2x32xf32>
    %123 = arith.addf %122, %63 : vector<2x32xf32>
    %cst_51 = arith.constant 1.000000e+00 : f32
    %124 = vector.broadcast %cst_51 : f32 to vector<2x32xf32>
    %125 = arith.cmpf oge, %123, %124 : vector<2x32xf32>
    %126 = arith.extui %125 : vector<2x32xi1> to vector<2x32xi32>
    %127 = arith.sitofp %126 : vector<2x32xi32> to vector<2x32xf32>
    %128 = arith.truncf %127 : vector<2x32xf32> to vector<2x32xbf16>
    %cst_52 = arith.constant 0.000000e+00 : f32
    %129 = vector.broadcast %cst_52 : f32 to vector<2x32xf32>
    %130 = arith.select %125, %129, %123 : vector<2x32xi1>, vector<2x32xf32>
    %131 = arith.mulf %109, %41 : vector<2x8xf32>
    %cst_53 = arith.constant dense<0.000000e+00> : vector<2x8xf32>
    %132 = tpu.matmul %128, %53, %cst_53 {dimension_numbers = #tpu.dot_dimension_numbers<[1], [0], [0], [1], [0, 0, 1, 1], [], []>} : vector<2x32xbf16>, vector<32x8xbf16>, vector<2x8xf32> -> vector<2x8xf32>
    %133 = arith.addf %131, %132 : vector<2x8xf32>
    %134 = arith.addf %133, %69 : vector<2x8xf32>
    %cst_54 = arith.constant 1.000000e+00 : f32
    %135 = vector.broadcast %cst_54 : f32 to vector<2x8xf32>
    %136 = arith.cmpf oge, %134, %135 : vector<2x8xf32>
    %137 = arith.extui %136 : vector<2x8xi1> to vector<2x8xi32>
    %138 = arith.sitofp %137 : vector<2x8xi32> to vector<2x8xf32>
    %c0_55 = arith.constant 0 : index
    %c16 = arith.constant 16 : index
    %139 = vector.load %arg10[%c0_55, %c16] : memref<2x128xf32, #tpu.memory_space<vmem>>, vector<2x8xf32>
    tpu.vector_store %arg10[%c0_55, %c16], %138 {strides = array<i32>} : memref<2x128xf32, #tpu.memory_space<vmem>>, vector<2x8xf32>,
    %c0_56 = arith.constant 0 : index
    %c24 = arith.constant 24 : index
    %140 = vector.load %arg10[%c0_56, %c24] : memref<2x128xf32, #tpu.memory_space<vmem>>, vector<2x8xf32>
    tpu.vector_store %arg10[%c0_56, %c24], %134 {strides = array<i32>} : memref<2x128xf32, #tpu.memory_space<vmem>>, vector<2x8xf32>,
    %cst_57 = arith.constant 0.000000e+00 : f32
    %141 = vector.broadcast %cst_57 : f32 to vector<2x8xf32>
    %142 = arith.select %136, %141, %134 : vector<2x8xi1>, vector<2x8xf32>
    %143 = arith.mulf %119, %33 : vector<2x32xf32>
    %144 = vector.extract_strided_slice %73 {offsets = [4, 0], sizes = [2, 32], strides = [1, 1]} : vector<16x32xf32> to vector<2x32xf32>
    %145 = arith.addf %143, %144 : vector<2x32xf32>
    %cst_58 = arith.constant 1.000000e+00 : f32
    %146 = vector.broadcast %cst_58 : f32 to vector<2x32xf32>
    %147 = arith.cmpf oge, %145, %146 : vector<2x32xf32>
    %148 = arith.extui %147 : vector<2x32xi1> to vector<2x32xi32>
    %149 = arith.sitofp %148 : vector<2x32xi32> to vector<2x32xf32>
    %150 = arith.truncf %149 : vector<2x32xf32> to vector<2x32xbf16>
    %cst_59 = arith.constant 0.000000e+00 : f32
    %151 = vector.broadcast %cst_59 : f32 to vector<2x32xf32>
    %152 = arith.select %147, %151, %145 : vector<2x32xi1>, vector<2x32xf32>
    %153 = arith.mulf %130, %37 : vector<2x32xf32>
    %cst_60 = arith.constant dense<0.000000e+00> : vector<2x32xf32>
    %154 = tpu.matmul %150, %49, %cst_60 {dimension_numbers = #tpu.dot_dimension_numbers<[1], [0], [0], [1], [0, 0, 1, 1], [], []>} : vector<2x32xbf16>, vector<32x32xbf16>, vector<2x32xf32> -> vector<2x32xf32>
    %155 = arith.addf %153, %154 : vector<2x32xf32>
    %156 = arith.addf %155, %63 : vector<2x32xf32>
    %cst_61 = arith.constant 1.000000e+00 : f32
    %157 = vector.broadcast %cst_61 : f32 to vector<2x32xf32>
    %158 = arith.cmpf oge, %156, %157 : vector<2x32xf32>
    %159 = arith.extui %158 : vector<2x32xi1> to vector<2x32xi32>
    %160 = arith.sitofp %159 : vector<2x32xi32> to vector<2x32xf32>
    %161 = arith.truncf %160 : vector<2x32xf32> to vector<2x32xbf16>
    %cst_62 = arith.constant 0.000000e+00 : f32
    %162 = vector.broadcast %cst_62 : f32 to vector<2x32xf32>
    %163 = arith.select %158, %162, %156 : vector<2x32xi1>, vector<2x32xf32>
    %164 = arith.mulf %142, %41 : vector<2x8xf32>
    %cst_63 = arith.constant dense<0.000000e+00> : vector<2x8xf32>
    %165 = tpu.matmul %161, %53, %cst_63 {dimension_numbers = #tpu.dot_dimension_numbers<[1], [0], [0], [1], [0, 0, 1, 1], [], []>} : vector<2x32xbf16>, vector<32x8xbf16>, vector<2x8xf32> -> vector<2x8xf32>
    %166 = arith.addf %164, %165 : vector<2x8xf32>
    %167 = arith.addf %166, %69 : vector<2x8xf32>
    %cst_64 = arith.constant 1.000000e+00 : f32
    %168 = vector.broadcast %cst_64 : f32 to vector<2x8xf32>
    %169 = arith.cmpf oge, %167, %168 : vector<2x8xf32>
    %170 = arith.extui %169 : vector<2x8xi1> to vector<2x8xi32>
    %171 = arith.sitofp %170 : vector<2x8xi32> to vector<2x8xf32>
    %c0_65 = arith.constant 0 : index
    %c32 = arith.constant 32 : index
    %172 = vector.load %arg10[%c0_65, %c32] : memref<2x128xf32, #tpu.memory_space<vmem>>, vector<2x8xf32>
    tpu.vector_store %arg10[%c0_65, %c32], %171 {strides = array<i32>} : memref<2x128xf32, #tpu.memory_space<vmem>>, vector<2x8xf32>,
    %c0_66 = arith.constant 0 : index
    %c40 = arith.constant 40 : index
    %173 = vector.load %arg10[%c0_66, %c40] : memref<2x128xf32, #tpu.memory_space<vmem>>, vector<2x8xf32>
    tpu.vector_store %arg10[%c0_66, %c40], %167 {strides = array<i32>} : memref<2x128xf32, #tpu.memory_space<vmem>>, vector<2x8xf32>,
    %cst_67 = arith.constant 0.000000e+00 : f32
    %174 = vector.broadcast %cst_67 : f32 to vector<2x8xf32>
    %175 = arith.select %169, %174, %167 : vector<2x8xi1>, vector<2x8xf32>
    %176 = arith.mulf %152, %33 : vector<2x32xf32>
    %177 = vector.extract_strided_slice %73 {offsets = [6, 0], sizes = [2, 32], strides = [1, 1]} : vector<16x32xf32> to vector<2x32xf32>
    %178 = arith.addf %176, %177 : vector<2x32xf32>
    %cst_68 = arith.constant 1.000000e+00 : f32
    %179 = vector.broadcast %cst_68 : f32 to vector<2x32xf32>
    %180 = arith.cmpf oge, %178, %179 : vector<2x32xf32>
    %181 = arith.extui %180 : vector<2x32xi1> to vector<2x32xi32>
    %182 = arith.sitofp %181 : vector<2x32xi32> to vector<2x32xf32>
    %183 = arith.truncf %182 : vector<2x32xf32> to vector<2x32xbf16>
    %cst_69 = arith.constant 0.000000e+00 : f32
    %184 = vector.broadcast %cst_69 : f32 to vector<2x32xf32>
    %185 = arith.select %180, %184, %178 : vector<2x32xi1>, vector<2x32xf32>
    %186 = arith.mulf %163, %37 : vector<2x32xf32>
    %cst_70 = arith.constant dense<0.000000e+00> : vector<2x32xf32>
    %187 = tpu.matmul %183, %49, %cst_70 {dimension_numbers = #tpu.dot_dimension_numbers<[1], [0], [0], [1], [0, 0, 1, 1], [], []>} : vector<2x32xbf16>, vector<32x32xbf16>, vector<2x32xf32> -> vector<2x32xf32>
    %188 = arith.addf %186, %187 : vector<2x32xf32>
    %189 = arith.addf %188, %63 : vector<2x32xf32>
    %cst_71 = arith.constant 1.000000e+00 : f32
    %190 = vector.broadcast %cst_71 : f32 to vector<2x32xf32>
    %191 = arith.cmpf oge, %189, %190 : vector<2x32xf32>
    %192 = arith.extui %191 : vector<2x32xi1> to vector<2x32xi32>
    %193 = arith.sitofp %192 : vector<2x32xi32> to vector<2x32xf32>
    %194 = arith.truncf %193 : vector<2x32xf32> to vector<2x32xbf16>
    %cst_72 = arith.constant 0.000000e+00 : f32
    %195 = vector.broadcast %cst_72 : f32 to vector<2x32xf32>
    %196 = arith.select %191, %195, %189 : vector<2x32xi1>, vector<2x32xf32>
    %197 = arith.mulf %175, %41 : vector<2x8xf32>
    %cst_73 = arith.constant dense<0.000000e+00> : vector<2x8xf32>
    %198 = tpu.matmul %194, %53, %cst_73 {dimension_numbers = #tpu.dot_dimension_numbers<[1], [0], [0], [1], [0, 0, 1, 1], [], []>} : vector<2x32xbf16>, vector<32x8xbf16>, vector<2x8xf32> -> vector<2x8xf32>
    %199 = arith.addf %197, %198 : vector<2x8xf32>
    %200 = arith.addf %199, %69 : vector<2x8xf32>
    %cst_74 = arith.constant 1.000000e+00 : f32
    %201 = vector.broadcast %cst_74 : f32 to vector<2x8xf32>
    %202 = arith.cmpf oge, %200, %201 : vector<2x8xf32>
    %203 = arith.extui %202 : vector<2x8xi1> to vector<2x8xi32>
    %204 = arith.sitofp %203 : vector<2x8xi32> to vector<2x8xf32>
    %c0_75 = arith.constant 0 : index
    %c48 = arith.constant 48 : index
    %205 = vector.load %arg10[%c0_75, %c48] : memref<2x128xf32, #tpu.memory_space<vmem>>, vector<2x8xf32>
    tpu.vector_store %arg10[%c0_75, %c48], %204 {strides = array<i32>} : memref<2x128xf32, #tpu.memory_space<vmem>>, vector<2x8xf32>,
    %c0_76 = arith.constant 0 : index
    %c56 = arith.constant 56 : index
    %206 = vector.load %arg10[%c0_76, %c56] : memref<2x128xf32, #tpu.memory_space<vmem>>, vector<2x8xf32>
    tpu.vector_store %arg10[%c0_76, %c56], %200 {strides = array<i32>} : memref<2x128xf32, #tpu.memory_space<vmem>>, vector<2x8xf32>,
    %cst_77 = arith.constant 0.000000e+00 : f32
    %207 = vector.broadcast %cst_77 : f32 to vector<2x8xf32>
    %208 = arith.select %202, %207, %200 : vector<2x8xi1>, vector<2x8xf32>
    %209 = arith.mulf %185, %33 : vector<2x32xf32>
    %210 = vector.extract_strided_slice %73 {offsets = [8, 0], sizes = [2, 32], strides = [1, 1]} : vector<16x32xf32> to vector<2x32xf32>
    %211 = arith.addf %209, %210 : vector<2x32xf32>
    %cst_78 = arith.constant 1.000000e+00 : f32
    %212 = vector.broadcast %cst_78 : f32 to vector<2x32xf32>
    %213 = arith.cmpf oge, %211, %212 : vector<2x32xf32>
    %214 = arith.extui %213 : vector<2x32xi1> to vector<2x32xi32>
    %215 = arith.sitofp %214 : vector<2x32xi32> to vector<2x32xf32>
    %216 = arith.truncf %215 : vector<2x32xf32> to vector<2x32xbf16>
    %cst_79 = arith.constant 0.000000e+00 : f32
    %217 = vector.broadcast %cst_79 : f32 to vector<2x32xf32>
    %218 = arith.select %213, %217, %211 : vector<2x32xi1>, vector<2x32xf32>
    %219 = arith.mulf %196, %37 : vector<2x32xf32>
    %cst_80 = arith.constant dense<0.000000e+00> : vector<2x32xf32>
    %220 = tpu.matmul %216, %49, %cst_80 {dimension_numbers = #tpu.dot_dimension_numbers<[1], [0], [0], [1], [0, 0, 1, 1], [], []>} : vector<2x32xbf16>, vector<32x32xbf16>, vector<2x32xf32> -> vector<2x32xf32>
    %221 = arith.addf %219, %220 : vector<2x32xf32>
    %222 = arith.addf %221, %63 : vector<2x32xf32>
    %cst_81 = arith.constant 1.000000e+00 : f32
    %223 = vector.broadcast %cst_81 : f32 to vector<2x32xf32>
    %224 = arith.cmpf oge, %222, %223 : vector<2x32xf32>
    %225 = arith.extui %224 : vector<2x32xi1> to vector<2x32xi32>
    %226 = arith.sitofp %225 : vector<2x32xi32> to vector<2x32xf32>
    %227 = arith.truncf %226 : vector<2x32xf32> to vector<2x32xbf16>
    %cst_82 = arith.constant 0.000000e+00 : f32
    %228 = vector.broadcast %cst_82 : f32 to vector<2x32xf32>
    %229 = arith.select %224, %228, %222 : vector<2x32xi1>, vector<2x32xf32>
    %230 = arith.mulf %208, %41 : vector<2x8xf32>
    %cst_83 = arith.constant dense<0.000000e+00> : vector<2x8xf32>
    %231 = tpu.matmul %227, %53, %cst_83 {dimension_numbers = #tpu.dot_dimension_numbers<[1], [0], [0], [1], [0, 0, 1, 1], [], []>} : vector<2x32xbf16>, vector<32x8xbf16>, vector<2x8xf32> -> vector<2x8xf32>
    %232 = arith.addf %230, %231 : vector<2x8xf32>
    %233 = arith.addf %232, %69 : vector<2x8xf32>
    %cst_84 = arith.constant 1.000000e+00 : f32
    %234 = vector.broadcast %cst_84 : f32 to vector<2x8xf32>
    %235 = arith.cmpf oge, %233, %234 : vector<2x8xf32>
    %236 = arith.extui %235 : vector<2x8xi1> to vector<2x8xi32>
    %237 = arith.sitofp %236 : vector<2x8xi32> to vector<2x8xf32>
    %c0_85 = arith.constant 0 : index
    %c64 = arith.constant 64 : index
    %238 = vector.load %arg10[%c0_85, %c64] : memref<2x128xf32, #tpu.memory_space<vmem>>, vector<2x8xf32>
    tpu.vector_store %arg10[%c0_85, %c64], %237 {strides = array<i32>} : memref<2x128xf32, #tpu.memory_space<vmem>>, vector<2x8xf32>,
    %c0_86 = arith.constant 0 : index
    %c72 = arith.constant 72 : index
    %239 = vector.load %arg10[%c0_86, %c72] : memref<2x128xf32, #tpu.memory_space<vmem>>, vector<2x8xf32>
    tpu.vector_store %arg10[%c0_86, %c72], %233 {strides = array<i32>} : memref<2x128xf32, #tpu.memory_space<vmem>>, vector<2x8xf32>,
    %cst_87 = arith.constant 0.000000e+00 : f32
    %240 = vector.broadcast %cst_87 : f32 to vector<2x8xf32>
    %241 = arith.select %235, %240, %233 : vector<2x8xi1>, vector<2x8xf32>
    %242 = arith.mulf %218, %33 : vector<2x32xf32>
    %243 = vector.extract_strided_slice %73 {offsets = [10, 0], sizes = [2, 32], strides = [1, 1]} : vector<16x32xf32> to vector<2x32xf32>
    %244 = arith.addf %242, %243 : vector<2x32xf32>
    %cst_88 = arith.constant 1.000000e+00 : f32
    %245 = vector.broadcast %cst_88 : f32 to vector<2x32xf32>
    %246 = arith.cmpf oge, %244, %245 : vector<2x32xf32>
    %247 = arith.extui %246 : vector<2x32xi1> to vector<2x32xi32>
    %248 = arith.sitofp %247 : vector<2x32xi32> to vector<2x32xf32>
    %249 = arith.truncf %248 : vector<2x32xf32> to vector<2x32xbf16>
    %cst_89 = arith.constant 0.000000e+00 : f32
    %250 = vector.broadcast %cst_89 : f32 to vector<2x32xf32>
    %251 = arith.select %246, %250, %244 : vector<2x32xi1>, vector<2x32xf32>
    %252 = arith.mulf %229, %37 : vector<2x32xf32>
    %cst_90 = arith.constant dense<0.000000e+00> : vector<2x32xf32>
    %253 = tpu.matmul %249, %49, %cst_90 {dimension_numbers = #tpu.dot_dimension_numbers<[1], [0], [0], [1], [0, 0, 1, 1], [], []>} : vector<2x32xbf16>, vector<32x32xbf16>, vector<2x32xf32> -> vector<2x32xf32>
    %254 = arith.addf %252, %253 : vector<2x32xf32>
    %255 = arith.addf %254, %63 : vector<2x32xf32>
    %cst_91 = arith.constant 1.000000e+00 : f32
    %256 = vector.broadcast %cst_91 : f32 to vector<2x32xf32>
    %257 = arith.cmpf oge, %255, %256 : vector<2x32xf32>
    %258 = arith.extui %257 : vector<2x32xi1> to vector<2x32xi32>
    %259 = arith.sitofp %258 : vector<2x32xi32> to vector<2x32xf32>
    %260 = arith.truncf %259 : vector<2x32xf32> to vector<2x32xbf16>
    %cst_92 = arith.constant 0.000000e+00 : f32
    %261 = vector.broadcast %cst_92 : f32 to vector<2x32xf32>
    %262 = arith.select %257, %261, %255 : vector<2x32xi1>, vector<2x32xf32>
    %263 = arith.mulf %241, %41 : vector<2x8xf32>
    %cst_93 = arith.constant dense<0.000000e+00> : vector<2x8xf32>
    %264 = tpu.matmul %260, %53, %cst_93 {dimension_numbers = #tpu.dot_dimension_numbers<[1], [0], [0], [1], [0, 0, 1, 1], [], []>} : vector<2x32xbf16>, vector<32x8xbf16>, vector<2x8xf32> -> vector<2x8xf32>
    %265 = arith.addf %263, %264 : vector<2x8xf32>
    %266 = arith.addf %265, %69 : vector<2x8xf32>
    %cst_94 = arith.constant 1.000000e+00 : f32
    %267 = vector.broadcast %cst_94 : f32 to vector<2x8xf32>
    %268 = arith.cmpf oge, %266, %267 : vector<2x8xf32>
    %269 = arith.extui %268 : vector<2x8xi1> to vector<2x8xi32>
    %270 = arith.sitofp %269 : vector<2x8xi32> to vector<2x8xf32>
    %c0_95 = arith.constant 0 : index
    %c80 = arith.constant 80 : index
    %271 = vector.load %arg10[%c0_95, %c80] : memref<2x128xf32, #tpu.memory_space<vmem>>, vector<2x8xf32>
    tpu.vector_store %arg10[%c0_95, %c80], %270 {strides = array<i32>} : memref<2x128xf32, #tpu.memory_space<vmem>>, vector<2x8xf32>,
    %c0_96 = arith.constant 0 : index
    %c88 = arith.constant 88 : index
    %272 = vector.load %arg10[%c0_96, %c88] : memref<2x128xf32, #tpu.memory_space<vmem>>, vector<2x8xf32>
    tpu.vector_store %arg10[%c0_96, %c88], %266 {strides = array<i32>} : memref<2x128xf32, #tpu.memory_space<vmem>>, vector<2x8xf32>,
    %cst_97 = arith.constant 0.000000e+00 : f32
    %273 = vector.broadcast %cst_97 : f32 to vector<2x8xf32>
    %274 = arith.select %268, %273, %266 : vector<2x8xi1>, vector<2x8xf32>
    %275 = arith.mulf %251, %33 : vector<2x32xf32>
    %276 = vector.extract_strided_slice %73 {offsets = [12, 0], sizes = [2, 32], strides = [1, 1]} : vector<16x32xf32> to vector<2x32xf32>
    %277 = arith.addf %275, %276 : vector<2x32xf32>
    %cst_98 = arith.constant 1.000000e+00 : f32
    %278 = vector.broadcast %cst_98 : f32 to vector<2x32xf32>
    %279 = arith.cmpf oge, %277, %278 : vector<2x32xf32>
    %280 = arith.extui %279 : vector<2x32xi1> to vector<2x32xi32>
    %281 = arith.sitofp %280 : vector<2x32xi32> to vector<2x32xf32>
    %282 = arith.truncf %281 : vector<2x32xf32> to vector<2x32xbf16>
    %cst_99 = arith.constant 0.000000e+00 : f32
    %283 = vector.broadcast %cst_99 : f32 to vector<2x32xf32>
    %284 = arith.select %279, %283, %277 : vector<2x32xi1>, vector<2x32xf32>
    %285 = arith.mulf %262, %37 : vector<2x32xf32>
    %cst_100 = arith.constant dense<0.000000e+00> : vector<2x32xf32>
    %286 = tpu.matmul %282, %49, %cst_100 {dimension_numbers = #tpu.dot_dimension_numbers<[1], [0], [0], [1], [0, 0, 1, 1], [], []>} : vector<2x32xbf16>, vector<32x32xbf16>, vector<2x32xf32> -> vector<2x32xf32>
    %287 = arith.addf %285, %286 : vector<2x32xf32>
    %288 = arith.addf %287, %63 : vector<2x32xf32>
    %cst_101 = arith.constant 1.000000e+00 : f32
    %289 = vector.broadcast %cst_101 : f32 to vector<2x32xf32>
    %290 = arith.cmpf oge, %288, %289 : vector<2x32xf32>
    %291 = arith.extui %290 : vector<2x32xi1> to vector<2x32xi32>
    %292 = arith.sitofp %291 : vector<2x32xi32> to vector<2x32xf32>
    %293 = arith.truncf %292 : vector<2x32xf32> to vector<2x32xbf16>
    %cst_102 = arith.constant 0.000000e+00 : f32
    %294 = vector.broadcast %cst_102 : f32 to vector<2x32xf32>
    %295 = arith.select %290, %294, %288 : vector<2x32xi1>, vector<2x32xf32>
    %296 = arith.mulf %274, %41 : vector<2x8xf32>
    %cst_103 = arith.constant dense<0.000000e+00> : vector<2x8xf32>
    %297 = tpu.matmul %293, %53, %cst_103 {dimension_numbers = #tpu.dot_dimension_numbers<[1], [0], [0], [1], [0, 0, 1, 1], [], []>} : vector<2x32xbf16>, vector<32x8xbf16>, vector<2x8xf32> -> vector<2x8xf32>
    %298 = arith.addf %296, %297 : vector<2x8xf32>
    %299 = arith.addf %298, %69 : vector<2x8xf32>
    %cst_104 = arith.constant 1.000000e+00 : f32
    %300 = vector.broadcast %cst_104 : f32 to vector<2x8xf32>
    %301 = arith.cmpf oge, %299, %300 : vector<2x8xf32>
    %302 = arith.extui %301 : vector<2x8xi1> to vector<2x8xi32>
    %303 = arith.sitofp %302 : vector<2x8xi32> to vector<2x8xf32>
    %c0_105 = arith.constant 0 : index
    %c96 = arith.constant 96 : index
    %304 = vector.load %arg10[%c0_105, %c96] : memref<2x128xf32, #tpu.memory_space<vmem>>, vector<2x8xf32>
    tpu.vector_store %arg10[%c0_105, %c96], %303 {strides = array<i32>} : memref<2x128xf32, #tpu.memory_space<vmem>>, vector<2x8xf32>,
    %c0_106 = arith.constant 0 : index
    %c104 = arith.constant 104 : index
    %305 = vector.load %arg10[%c0_106, %c104] : memref<2x128xf32, #tpu.memory_space<vmem>>, vector<2x8xf32>
    tpu.vector_store %arg10[%c0_106, %c104], %299 {strides = array<i32>} : memref<2x128xf32, #tpu.memory_space<vmem>>, vector<2x8xf32>,
    %cst_107 = arith.constant 0.000000e+00 : f32
    %306 = vector.broadcast %cst_107 : f32 to vector<2x8xf32>
    %307 = arith.select %301, %306, %299 : vector<2x8xi1>, vector<2x8xf32>
    %308 = arith.mulf %284, %33 : vector<2x32xf32>
    %309 = vector.extract_strided_slice %73 {offsets = [14, 0], sizes = [2, 32], strides = [1, 1]} : vector<16x32xf32> to vector<2x32xf32>
    %310 = arith.addf %308, %309 : vector<2x32xf32>
    %cst_108 = arith.constant 1.000000e+00 : f32
    %311 = vector.broadcast %cst_108 : f32 to vector<2x32xf32>
    %312 = arith.cmpf oge, %310, %311 : vector<2x32xf32>
    %313 = arith.extui %312 : vector<2x32xi1> to vector<2x32xi32>
    %314 = arith.sitofp %313 : vector<2x32xi32> to vector<2x32xf32>
    %315 = arith.truncf %314 : vector<2x32xf32> to vector<2x32xbf16>
    %316 = arith.mulf %295, %37 : vector<2x32xf32>
    %cst_109 = arith.constant dense<0.000000e+00> : vector<2x32xf32>
    %317 = tpu.matmul %315, %49, %cst_109 {dimension_numbers = #tpu.dot_dimension_numbers<[1], [0], [0], [1], [0, 0, 1, 1], [], []>} : vector<2x32xbf16>, vector<32x32xbf16>, vector<2x32xf32> -> vector<2x32xf32>
    %318 = arith.addf %316, %317 : vector<2x32xf32>
    %319 = arith.addf %318, %63 : vector<2x32xf32>
    %cst_110 = arith.constant 1.000000e+00 : f32
    %320 = vector.broadcast %cst_110 : f32 to vector<2x32xf32>
    %321 = arith.cmpf oge, %319, %320 : vector<2x32xf32>
    %322 = arith.extui %321 : vector<2x32xi1> to vector<2x32xi32>
    %323 = arith.sitofp %322 : vector<2x32xi32> to vector<2x32xf32>
    %324 = arith.truncf %323 : vector<2x32xf32> to vector<2x32xbf16>
    %325 = arith.mulf %307, %41 : vector<2x8xf32>
    %cst_111 = arith.constant dense<0.000000e+00> : vector<2x8xf32>
    %326 = tpu.matmul %324, %53, %cst_111 {dimension_numbers = #tpu.dot_dimension_numbers<[1], [0], [0], [1], [0, 0, 1, 1], [], []>} : vector<2x32xbf16>, vector<32x8xbf16>, vector<2x8xf32> -> vector<2x8xf32>
    %327 = arith.addf %325, %326 : vector<2x8xf32>
    %328 = arith.addf %327, %69 : vector<2x8xf32>
    %cst_112 = arith.constant 1.000000e+00 : f32
    %329 = vector.broadcast %cst_112 : f32 to vector<2x8xf32>
    %330 = arith.cmpf oge, %328, %329 : vector<2x8xf32>
    %331 = arith.extui %330 : vector<2x8xi1> to vector<2x8xi32>
    %332 = arith.sitofp %331 : vector<2x8xi32> to vector<2x8xf32>
    %c0_113 = arith.constant 0 : index
    %c112 = arith.constant 112 : index
    %333 = vector.load %arg10[%c0_113, %c112] : memref<2x128xf32, #tpu.memory_space<vmem>>, vector<2x8xf32>
    tpu.vector_store %arg10[%c0_113, %c112], %332 {strides = array<i32>} : memref<2x128xf32, #tpu.memory_space<vmem>>, vector<2x8xf32>,
    %c0_114 = arith.constant 0 : index
    %c120 = arith.constant 120 : index
    %334 = vector.load %arg10[%c0_114, %c120] : memref<2x128xf32, #tpu.memory_space<vmem>>, vector<2x8xf32>
    tpu.vector_store %arg10[%c0_114, %c120], %328 {strides = array<i32>} : memref<2x128xf32, #tpu.memory_space<vmem>>, vector<2x8xf32>,
    return
  }
}

</mosaic_0001>

<bundles_post_ra>
// kernel: tpu_custom_call.1
= control target key start
LH: loop header
LB: loop body
LE: loop exit
PB: predicated region body
PF: predicated region fallthrough
CT: control target
= control target key end

     0   :  { %15 = vsyncpa [#allocation3], 0  ;;  %s1949_s0 = inlined_call_operand.hbm [shape: bf16[16,16], index: 0, kind: input, shape index: {}]   ;;  %s1950_s1 = inlined_call_operand.vmem [shape: f32[16,32], index: 1, kind: input, shape index: {}]   ;;  %s1951_s2 = inlined_call_operand.vmem [shape: f32[1,32], index: 2, kind: input, shape index: {}]   ;;  %s1952_s3 = inlined_call_operand.vmem [shape: f32[1,32], index: 3, kind: input, shape index: {}]   ;;  %s1953_s4 = inlined_call_operand.vmem [shape: f32[32,32], index: 4, kind: input, shape index: {}]   ;;  %s1954_s5 = inlined_call_operand.hbm [shape: f32[1,32], index: 5, kind: input, shape index: {}]   ;;  %s1955_s6 = inlined_call_operand.vmem [shape: f32[1,32], index: 6, kind: input, shape index: {}]   ;;  %s1956_s7 = inlined_call_operand.vmem [shape: f32[32,8], index: 7, kind: input, shape index: {}]   ;;  %s1957_s8 = inlined_call_operand.vmem [shape: f32[1,8], index: 8, kind: input, shape index: {}]   ;;  %s1958_s9 = inlined_call_operand.vmem [shape: f32[1,8], index: 9, kind: input, shape index: {}]   ;;  %s1959_s10 = inlined_call_operand.hbm [shape: f32[2,128], index: 10, kind: output, shape index: {}]  }
   0x1   :  { %16 = vsyncpa [#allocation6], 0 }
   0x2   :  { %17 = vsyncpa [#allocation4], 0  ;;  %s1561_s13 = smov [#allocation2]   ;;  %s1489_s17 = scalar_lea.hbm %s1949_s0, 128 }
   0x3   :  { %s23_s14 = sshll.u32 %s1561_s13, 4  ;;  %p1490_p0 = scmp.ne.s32.totalorder %s1949_s0, %s1489_s17  ;;  %s24_s14 = int_to_ptr.vmem [resolvable:$true] %s23_s14 }
   0x4   :  { %p1493_p1 = scmp.lt.u32.totalorder %s1489_s17, %s1949_s0 }
   0x6   :  { %p1495_p2 = pnand %p1493_p1, %p1490_p0 }
   0x8   :  { %1498 = shalt.err (!%p1495_p2)
}
   0x9   :  { %s1499_s22 = scalar_lea.vmem %s24_s14, 128  ;;  %p1504_p4 = scmp.lt.s32.totalorder %s24_s14, %s24_s14 }
   0xa   :  { %p1500_p3 = scmp.ne.s32.totalorder %s24_s14, %s1499_s22  ;;  %p1505_p5 = scmp.lt.s32.totalorder %s1499_s22, %s1499_s22 }
   0xc   :  { %p1506_p6 = por %p1505_p5, %p1504_p4 }
   0xe   :  { %p1507_p7 = pnand %p1506_p6, %p1500_p3 }
  0x10   :  { %1510 = shalt.err (!%p1507_p7)
}
  0x11   :  { %s1562_s23 = smov 64   ;;  %s1563_s24 = smov 4  }
  0x12   :  { %29 = dma.hbm_to_vmem [thread:$0]  %s1949_s0, 128, %s24_s14, [#allocation3], %s1562_s23, %s1562_s23, %s1563_s24  }
  0x13   :  { %s1564_s27 = smov [#allocation5]   ;;  %s1511_s11 = scalar_lea.hbm %s1954_s5, 16 }
  0x14   :  { %s44_s28 = sshll.u32 %s1564_s27, 4  ;;  %p1512_p8 = scmp.ne.s32.totalorder %s1954_s5, %s1511_s11  ;;  %s45_s28 = int_to_ptr.vmem [resolvable:$true] %s44_s28 }
  0x15   :  { %p1515_p9 = scmp.lt.u32.totalorder %s1511_s11, %s1954_s5 }
  0x17   :  { %p1517_p10 = pnand %p1515_p9, %p1512_p8 }
  0x19   :  { %1520 = shalt.err (!%p1517_p10)
}
  0x1a   :  { %s1521_s17 = scalar_lea.vmem %s45_s28, 16  ;;  %s1525_s0 = scalar_lea.vmem %s45_s28, 32 }
  0x1b   :  { %p1522_p11 = scmp.ne.s32.totalorder %s45_s28, %s1521_s17  ;;  %p1526_p12 = scmp.lt.s32.totalorder %s45_s28, %s45_s28 }
  0x1c   :  { %p1527_p13 = scmp.lt.s32.totalorder %s1525_s0, %s1521_s17 }
  0x1e   :  { %p1528_p0 = por %p1527_p13, %p1526_p12 }
  0x20   :  { %p1529_p1 = pnand %p1528_p0, %p1522_p11 }
  0x22   :  { %1532 = shalt.err (!%p1529_p1)
}
  0x23   :  { %47 = dma.hbm_to_vmem [thread:$0]  %s1954_s5, 16, %s45_s28, [#allocation6]  }
  0x24   :  { %1555 = dma.done.wait [#allocation3], 128  }
  0x25   :  { %1556 = vsyncadd [#allocation3], 4294967168 }
  0x26   :  { %1557 = dma.done.wait [#allocation6], 16  }
  0x27   :  { %1558 = vsyncadd [#allocation6], 4294967280  ;;  %v1565_v0 = vmov 0.0   ;;  %vm1566_vm0 = vmmov 0   ;;  %v63_v1 = vld [vmem:[%s1952_s3] sm:$0x1]  ;;  %v95_v7 = vlaneseq }
  0x28   :  { %1315 = vmatprep.subr.bf16.mxu0 %v1565_v0  ;;  %1317 = vmatprep.mubr.msk.bf16.mxu0 %vm1566_vm0, %v1565_v0  ;;  %v1220_v2 = vmul.f32 -1.442695, %v63_v1  ;;  %v114_v12 = vld [vmem:[%s1950_s1] sm:$0xff]  ;;  %v115_v13 = vld [vmem:[%s1950_s1 + $0x8] sm:$0xff]  ;;  %vm191_vm1 = vcmask 130048   ;;  %v127_v33 = vld [vmem:[%s1953_s4 + $0x10] sm:$0xff] }
  0x29   :  { %1321 = vmatprep.subr.bf16.mxu1 %v1565_v0  ;;  %1325 = vmatprep.mubr.msk.bf16.mxu1 %vm1566_vm0, %v1565_v0  ;;  %v96_v8 = vshrl.u32 %v95_v7, 7  ;;  %v1470_v18 = vld [vmem:[#allocation2] sm:$0xff]   ;;  %v126_v29 = vld [vmem:[%s1953_s4 + $0x8] sm:$0xff]  ;;  %v128_v34 = vld [vmem:[%s1953_s4 + $0x18] sm:$0xff]  ;;  %vm244_vm3 = vcmask 261120   ;;  %s1567_s5 = smov 8  }
  0x2a   :  { %1471 = vpow2.f32 %v1220_v2  ;;  %v73_v19 = vld [vmem:[%s1955_s6] sm:$0x1]  ;;  %s1569_s21 = smov 16   ;;  %s1570_s22 = smov 40  }
  0x2b   :  { %v1672_v9 = vsub.s32 0, %v96_v8  ;;  %v1221_v20 = vmul.f32 -1.442695, %v73_v19  ;;  %v125_v28 = vld [vmem:[%s1953_s4] sm:$0xff]  ;;  %s1571_s3 = smov 32   ;;  %s1572_s24 = smov 56  }
  0x2c   :  { %v157_v38 = vld [vmem:[%s1951_s2] sm:$0x1]  ;;  %s1573_s25 = smov 48   ;;  %s1574_s1 = smov 72  }
  0x2d   :  { %s1575_s26 = smov 88   ;;  %s1576_s27 = smov 80  }
  0x2e   :  { %s1578_s6 = smov 96   ;;  %s1579_s28 = smov 120  }
  0x2f   :  { %s1580_s29 = smov 112   ;;  %s1581_s30 = smov [#allocation7]  }
  0x30   :  { %s1210_s11 = sshll.u32 %s1581_s30, 4  ;;  %s1211_s11 = int_to_ptr.vmem [resolvable:$true] %s1210_s11 }
  0x31   :  { %s1533_s12 = scalar_lea.vmem %s1211_s11, 32  ;;  %p1538_p3 = scmp.lt.s32.totalorder %s1211_s11, %s1211_s11 }
  0x32   :  { %p1534_p2 = scmp.ne.s32.totalorder %s1211_s11, %s1533_s12  ;;  %p1539_p4 = scmp.lt.s32.totalorder %s1533_s12, %s1533_s12 }
  0x34   :  { %v1472_v3 = vpop.eup %1471  ;;  %p1540_p5 = por %p1539_p4, %p1538_p3 }
  0x35   :  { %v67_v4 = vadd.f32 1.0, %v1472_v3 }
  0x36   :  { %p1541_p6 = pnand %p1540_p5, %p1534_p2 }
  0x37   :  { %1473 = vrcp.f32 %v67_v4 }
  0x41   :  { %v1474_v5 = vpop.eup %1473 }
  0x42   :  { %v70_v6 = vadd.f32 0.1, %v1474_v5 }
  0x44   :  { %1475 = vrcp.f32 %v70_v6 }
  0x45   :  { %1477 = vpow2.f32 %v1221_v20 }
  0x4e   :  { %v1476_v10 = vpop.eup %1475 }
  0x4f   :  { %v72_v11 = vmul.f32 0.001, %v1476_v10  ;;  %v1478_v21 = vpop.eup %1477 }
  0x50   :  { %v77_v22 = vadd.f32 1.0, %v1478_v21 }
  0x51   :  { %v120_v14 = vrot.slane %v72_v11, %v1672_v9  ;;  %v93_v39 = vsub.f32 1.0, %v72_v11  ;;  %v159_v40 = vmul.f32 %v157_v38, %v72_v11 }
  0x52   :  { %1479 = vrcp.f32 %v77_v22 }
  0x53   :  { %v122_v15 = vmul.f32 %v120_v14, %v114_v12  ;;  %v123_v16 = vmul.f32 %v120_v14, %v115_v13  ;;  %v1715_v41 = vrot.slane %v93_v39, %v1672_v9  ;;  %v184_v42 = vrot.slane %v159_v40, %v1672_v9 }
  0x55   :  { %v124_v17 = vpack.c.bf16 %v123_v16, %v122_v15  ;;  %v236_v43 = vmul.f32 0.0, %v1715_v41 }
  0x57   :  { %1316 = vmatpush3.bf16.msra.mxu0 %v124_v17 }
  0x58   :  { %1329 = vmatprep.subr.bf16.mxu0 %v1565_v0 }
  0x5a   :  { %1318 = vmatmul.mubr.msk.bf16.vlgmr.msra.gmra.mrb[0].mxu0 %vm191_vm1, %v1470_v18 }
  0x5b   :  { %1333 = vmatprep.mubr.msk.bf16.mxu0 %vm1566_vm0, %v1565_v0 }
  0x5c   :  { %v1480_v23 = vpop.eup %1479 }
  0x5d   :  { %v80_v24 = vadd.f32 0.1, %v1480_v23 }
  0x5f   :  { %1481 = vrcp.f32 %v80_v24 }
  0x69   :  { %v1482_v25 = vpop.eup %1481 }
  0x6a   :  { %v1687_v26 = vmul.f32 0.001, %v1482_v25 }
  0x6c   :  { %v133_v27 = vrot.slane %v1687_v26, %v1672_v9 }
  0x6e   :  { %v135_v30 = vmul.f32 %v133_v27, %v125_v28  ;;  %v136_v31 = vmul.f32 %v133_v27, %v126_v29  ;;  %v137_v35 = vmul.f32 %v133_v27, %v127_v33  ;;  %v138_v36 = vmul.f32 %v133_v27, %v128_v34  ;;  %v83_v28 = vld [vmem:[%s1958_s9] sm:$0x1] }
  0x70   :  { %v1697_v32 = vpack.c.bf16 %v136_v31, %v135_v30  ;;  %v1707_v37 = vpack.c.bf16 %v138_v36, %v137_v35  ;;  %v1222_v30 = vmul.f32 -1.442695, %v83_v28 }
  0x72   :  { %1322 = vmatpush3.bf16.msra.mxu1 %v1697_v32  ;;  %1483 = vpow2.f32 %v1222_v30 }
  0x73   :  { %1323 = vmatprep.subr.bf16.mxu1 %v1565_v0 }
  0x76   :  { %1324 = vmatpush3.bf16.msra.mxu1 %v1707_v37 }
  0x77   :  { %1337 = vmatprep.subr.bf16.mxu1 %v1565_v0 }
  0x7c   :  { %v1484_v34 = vpop.eup %1483 }
  0x7d   :  { %v87_v36 = vadd.f32 1.0, %v1484_v34 }
  0x7f   :  { %1485 = vrcp.f32 %v87_v36 }
  0x89   :  { %v1486_v39 = vpop.eup %1485 }
  0x8a   :  { %v90_v40 = vadd.f32 0.1, %v1486_v39 }
  0x8c   :  { %1487 = vrcp.f32 %v90_v40 }
 0x12d   :  { %v229_v44 = vpop.f32.mrb[0].mxu0 }
 0x12e   :  { %v230_v45 = vadd.f32 %v229_v44, %v184_v42  ;;  %v1319_v46 = vpop.f32.mrb[1].mxu0 }
 0x12f   :  { %v232_v47 = vpop.f32.mrb[2].mxu0 }
 0x130   :  { %v237_v48 = vadd.f32 %v236_v43, %v230_v45  ;;  %v1320_v49 = vpop.f32.mrb[3].mxu0  ;;  %v1719_v50 = vadd.f32 %v232_v47, %v184_v42  ;;  %v355_v53 = vrot.slane %v230_v45, 2  ;;  %v477_v59 = vrot.slane %v230_v45, 4  ;;  %v141_v43 = vld [vmem:[%s1956_s7] sm:$0xff]  ;;  %v143_v47 = vld [vmem:[%s1956_s7 + $0x10] sm:$0xff] }
 0x131   :  { %v599_v2 = vrot.slane %v230_v45, 6 }
 0x132   :  { %vm238_vm2 = vcmp.ge.f32.partialorder %v237_v48, 1.0  ;;  %v842_v13 = vrot.slane %v1719_v50, 2  ;;  %v964_v19 = vrot.slane %v1719_v50, 4  ;;  %v1086_v24 = vrot.slane %v1719_v50, 6 }
 0x133   :  { %v242_v51 = vsel %vm238_vm2, 0.0, %v237_v48  ;;  %v1225_v54 = vsel %vm238_vm2, 1.0, %v1565_v0  ;;  %v144_v48 = vld [vmem:[%s1956_s7 + $0x18] sm:$0xff] }
 0x134   :  { %v353_v52 = vmul.f32 %v242_v51, %v1715_v41  ;;  %v241_v55 = vpack.c.bf16 %v1225_v54, %v1225_v54 }
 0x136   :  { %v357_v56 = vadd.f32 %v355_v53, %v353_v52  ;;  %1326 = vmatmul.mubr.msk.bf16.vlgmr.msra.gmra.mrb[0].mxu1 %vm244_vm3, %v241_v55  ;;  %v100_v52 = vsub.f32 1.0, %v1687_v26  ;;  %v160_v53 = vld [vmem:[#allocation5] sm:$0x1] }
 0x137   :  { %1338 = vmatpush3.bf16.msra.mxu1 %v1697_v32  ;;  %1341 = vmatprep.mubr.msk.bf16.mxu1 %vm1566_vm0, %v1565_v0  ;;  %v162_v55 = vmul.f32 %v160_v53, %v1687_v26 }
 0x138   :  { %vm358_vm4 = vcmp.ge.f32.partialorder %v357_v56, 1.0  ;;  %1339 = vmatprep.subr.bf16.mxu1 %v1565_v0  ;;  %v1822_v54 = vrot.slane %v100_v52, %v1672_v9 }
 0x139   :  { %v362_v57 = vsel %vm358_vm4, 0.0, %v357_v56  ;;  %v1230_v60 = vsel %vm358_vm4, 1.0, %v1565_v0 }
 0x13a   :  { %v476_v58 = vmul.f32 %v362_v57, %v1715_v41  ;;  %v361_v62 = vpack.c.bf16 %v1230_v60, %v1230_v60  ;;  %v243_v56 = vmul.f32 0.0, %v1822_v54  ;;  %v1827_v57 = vrot.slane %v162_v55, %v1672_v9 }
 0x13b   :  { %1340 = vmatpush3.bf16.msra.mxu1 %v1707_v37 }
 0x13c   :  { %v479_v61 = vadd.f32 %v477_v59, %v476_v58  ;;  %1353 = vmatprep.subr.bf16.mxu1 %v1565_v0 }
 0x13e   :  { %vm480_vm5 = vcmp.ge.f32.partialorder %v479_v61, 1.0  ;;  %1342 = vmatmul.mubr.msk.bf16.vlgmr.msra.gmra.mrb[4].mxu1 %vm244_vm3, %v361_v62 }
 0x13f   :  { %v484_v63 = vsel %vm480_vm5, 0.0, %v479_v61  ;;  %1354 = vmatpush3.bf16.msra.mxu1 %v1697_v32  ;;  %1357 = vmatprep.mubr.msk.bf16.mxu1 %vm1566_vm0, %v1565_v0  ;;  %v1235_v4 = vsel %vm480_vm5, 1.0, %v1565_v0 }
 0x140   :  { %v598_v1 = vmul.f32 %v484_v63, %v1715_v41  ;;  %1355 = vmatprep.subr.bf16.mxu1 %v1565_v0  ;;  %v483_v6 = vpack.c.bf16 %v1235_v4, %v1235_v4 }
 0x142   :  { %v601_v3 = vadd.f32 %v599_v2, %v598_v1 }
 0x143   :  { %1356 = vmatpush3.bf16.msra.mxu1 %v1707_v37 }
 0x144   :  { %vm602_vm6 = vcmp.ge.f32.partialorder %v601_v3, 1.0  ;;  %1369 = vmatprep.subr.bf16.mxu1 %v1565_v0 }
 0x145   :  { %v606_v5 = vsel %vm602_vm6, 0.0, %v601_v3  ;;  %v1240_v10 = vsel %vm602_vm6, 1.0, %v1565_v0 }
 0x146   :  { %v720_v7 = vmul.f32 %v606_v5, %v1715_v41  ;;  %1358 = vmatmul.mubr.msk.bf16.vlgmr.msra.gmra.mrb[8].mxu1 %vm244_vm3, %v483_v6  ;;  %v605_v14 = vpack.c.bf16 %v1240_v10, %v1240_v10 }
 0x147   :  { %1370 = vmatpush3.bf16.msra.mxu1 %v1697_v32  ;;  %1373 = vmatprep.mubr.msk.bf16.mxu1 %vm1566_vm0, %v1565_v0 }
 0x148   :  { %v721_v8 = vadd.f32 %v720_v7, %v1719_v50  ;;  %1371 = vmatprep.subr.bf16.mxu1 %v1565_v0 }
 0x14a   :  { %vm722_vm7 = vcmp.ge.f32.partialorder %v721_v8, 1.0 }
 0x14b   :  { %v726_v11 = vsel %vm722_vm7, 0.0, %v721_v8  ;;  %1372 = vmatpush3.bf16.msra.mxu1 %v1707_v37  ;;  %v1245_v17 = vsel %vm722_vm7, 1.0, %v1565_v0 }
 0x14c   :  { %v840_v12 = vmul.f32 %v726_v11, %v1715_v41  ;;  %1385 = vmatprep.subr.bf16.mxu1 %v1565_v0  ;;  %v725_v21 = vpack.c.bf16 %v1245_v17, %v1245_v17 }
 0x14e   :  { %v844_v15 = vadd.f32 %v842_v13, %v840_v12  ;;  %1374 = vmatmul.mubr.msk.bf16.vlgmr.msra.gmra.mrb[12].mxu1 %vm244_vm3, %v605_v14 }
 0x14f   :  { %1386 = vmatpush3.bf16.msra.mxu1 %v1697_v32  ;;  %1389 = vmatprep.mubr.msk.bf16.mxu1 %vm1566_vm0, %v1565_v0 }
 0x150   :  { %vm845_vm8 = vcmp.ge.f32.partialorder %v844_v15, 1.0  ;;  %1387 = vmatprep.subr.bf16.mxu1 %v1565_v0 }
 0x151   :  { %v849_v16 = vsel %vm845_vm8, 0.0, %v844_v15  ;;  %v1250_v27 = vsel %vm845_vm8, 1.0, %v1565_v0 }
 0x152   :  { %v963_v18 = vmul.f32 %v849_v16, %v1715_v41  ;;  %v848_v29 = vpack.c.bf16 %v1250_v27, %v1250_v27 }
 0x153   :  { %1388 = vmatpush3.bf16.msra.mxu1 %v1707_v37 }
 0x154   :  { %v966_v20 = vadd.f32 %v964_v19, %v963_v18  ;;  %1401 = vmatprep.subr.bf16.mxu1 %v1565_v0 }
 0x156   :  { %vm967_vm9 = vcmp.ge.f32.partialorder %v966_v20, 1.0  ;;  %1390 = vmatmul.mubr.msk.bf16.vlgmr.msra.gmra.mrb[16].mxu1 %vm244_vm3, %v725_v21 }
 0x157   :  { %v971_v22 = vsel %vm967_vm9, 0.0, %v966_v20  ;;  %1402 = vmatpush3.bf16.msra.mxu1 %v1697_v32  ;;  %1405 = vmatprep.mubr.msk.bf16.mxu1 %vm1566_vm0, %v1565_v0  ;;  %v1255_v31 = vsel %vm967_vm9, 1.0, %v1565_v0 }
 0x158   :  { %v1085_v23 = vmul.f32 %v971_v22, %v1715_v41  ;;  %1403 = vmatprep.subr.bf16.mxu1 %v1565_v0  ;;  %v970_v33 = vpack.c.bf16 %v1255_v31, %v1255_v31  ;;  %v1488_v41 = vpop.eup %1487 }
 0x15a   :  { %v1088_v25 = vadd.f32 %v1086_v24, %v1085_v23 }
 0x15b   :  { %1404 = vmatpush3.bf16.msra.mxu1 %v1707_v37 }
 0x15c   :  { %1417 = vmatprep.subr.bf16.mxu1 %v1565_v0  ;;  %vm1089_vm10 = vcmp.ge.f32.partialorder %v1088_v25, 1.0 }
 0x15d   :  { %v1260_v35 = vsel %vm1089_vm10, 1.0, %v1565_v0 }
 0x15e   :  { %1406 = vmatmul.mubr.msk.bf16.vlgmr.msra.gmra.mrb[20].mxu1 %vm244_vm3, %v848_v29  ;;  %v1092_v38 = vpack.c.bf16 %v1260_v35, %v1260_v35 }
 0x15f   :  { %1418 = vmatpush3.bf16.msra.mxu1 %v1697_v32  ;;  %1421 = vmatprep.mubr.msk.bf16.mxu1 %vm1566_vm0, %v1565_v0 }
 0x160   :  { %1419 = vmatprep.subr.bf16.mxu1 %v1565_v0 }
 0x163   :  { %1420 = vmatpush3.bf16.msra.mxu1 %v1707_v37 }
 0x164   :  { %1433 = vmatprep.subr.bf16.mxu1 %v1565_v0 }
 0x166   :  { %1422 = vmatmul.mubr.msk.bf16.vlgmr.msra.gmra.mrb[24].mxu1 %vm244_vm3, %v970_v33 }
 0x167   :  { %1434 = vmatpush3.bf16.msra.mxu1 %v1697_v32  ;;  %1437 = vmatprep.mubr.msk.bf16.mxu1 %vm1566_vm0, %v1565_v0  ;;  %v1796_v32 = vmul.f32 0.001, %v1488_v41 }
 0x168   :  { %1435 = vmatprep.subr.bf16.mxu1 %v1565_v0 }
 0x169   :  { %v149_v42 = vrot.slane %v1796_v32, %v1672_v9 }
 0x16b   :  { %1436 = vmatpush3.bf16.msra.mxu1 %v1707_v37  ;;  %v142_v37 = vld [vmem:[%s1956_s7 + $0x8] sm:$0xff]  ;;  %v151_v44 = vmul.f32 %v149_v42, %v141_v43  ;;  %v153_v49 = vmul.f32 %v149_v42, %v143_v47  ;;  %v154_v50 = vmul.f32 %v149_v42, %v144_v48 }
 0x16c   :  { %v152_v45 = vmul.f32 %v149_v42, %v142_v37 }
 0x16d   :  { %v1816_v51 = vpack.c.bf16 %v154_v50, %v153_v49 }
 0x16e   :  { %1438 = vmatmul.mubr.msk.bf16.vlgmr.msra.gmra.mrb[28].mxu1 %vm244_vm3, %v1092_v38  ;;  %v1806_v46 = vpack.c.bf16 %v152_v45, %v151_v44 }
 0x170   :  { %1330 = vmatpush3.bf16.msra.mxu0 %v1806_v46 }
 0x171   :  { %1331 = vmatprep.subr.bf16.mxu0 %v1565_v0 }
 0x174   :  { %1332 = vmatpush3.bf16.msra.mxu0 %v1816_v51 }
 0x175   :  { %1345 = vmatprep.subr.bf16.mxu0 %v1565_v0 }
 0x209   :  { %v282_v58 = vpop.f32.mrb[0].mxu1 }
 0x20a   :  { %v288_v59 = vadd.f32 %v282_v58, %v243_v56  ;;  %v1327_v60 = vpop.f32.mrb[1].mxu1 }
 0x20b   :  { %v285_v61 = vpop.f32.mrb[2].mxu1 }
 0x20c   :  { %v289_v62 = vadd.f32 %v288_v59, %v1827_v57  ;;  %v1328_v63 = vpop.f32.mrb[3].mxu1 }
 0x20e   :  { %vm290_vm11 = vcmp.ge.f32.partialorder %v289_v62, 1.0 }
 0x20f   :  { %v1227_v1 = vsel %vm290_vm11, 1.0, %v1565_v0  ;;  %v294_v2 = vsel %vm290_vm11, 0.0, %v289_v62 }
 0x210   :  { %v293_v3 = vpack.c.bf16 %v1227_v1, %v1227_v1  ;;  %v363_v4 = vmul.f32 %v294_v2, %v1822_v54 }
 0x211   :  { %v401_v26 = vpop.f32.mrb[4].mxu1 }
 0x212   :  { %v407_v5 = vadd.f32 %v401_v26, %v363_v4  ;;  %1334 = vmatmul.mubr.msk.bf16.vlgmr.msra.gmra.mrb[4].mxu0 %vm244_vm3, %v293_v3  ;;  %v1343_v6 = vpop.f32.mrb[5].mxu1 }
 0x213   :  { %1346 = vmatpush3.bf16.msra.mxu0 %v1806_v46  ;;  %v404_v7 = vpop.f32.mrb[6].mxu1  ;;  %1349 = vmatprep.mubr.msk.bf16.mxu0 %vm1566_vm0, %v1565_v0 }
 0x214   :  { %v408_v8 = vadd.f32 %v407_v5, %v1827_v57  ;;  %v1344_v10 = vpop.f32.mrb[7].mxu1  ;;  %1347 = vmatprep.subr.bf16.mxu0 %v1565_v0 }
 0x216   :  { %vm409_vm12 = vcmp.ge.f32.partialorder %v408_v8, 1.0 }
 0x217   :  { %1348 = vmatpush3.bf16.msra.mxu0 %v1816_v51  ;;  %v1232_v11 = vsel %vm409_vm12, 1.0, %v1565_v0  ;;  %v413_v12 = vsel %vm409_vm12, 0.0, %v408_v8  ;;  %vm350_vm12 = vcmask 123968  }
 0x218   :  { %v412_v13 = vpack.c.bf16 %v1232_v11, %v1232_v11  ;;  %v485_v14 = vmul.f32 %v413_v12, %v1822_v54  ;;  %1361 = vmatprep.subr.bf16.mxu0 %v1565_v0 }
 0x219   :  { %v523_v15 = vpop.f32.mrb[8].mxu1 }
 0x21a   :  { %v529_v16 = vadd.f32 %v523_v15, %v485_v14  ;;  %1350 = vmatmul.mubr.msk.bf16.vlgmr.msra.gmra.mrb[8].mxu0 %vm244_vm3, %v412_v13  ;;  %v1359_v17 = vpop.f32.mrb[9].mxu1  ;;  %v107_v15 = vsub.f32 1.0, %v1796_v32 }
 0x21b   :  { %1362 = vmatpush3.bf16.msra.mxu0 %v1806_v46  ;;  %v526_v18 = vpop.f32.mrb[10].mxu1  ;;  %1365 = vmatprep.mubr.msk.bf16.mxu0 %vm1566_vm0, %v1565_v0 }
 0x21c   :  { %v530_v19 = vadd.f32 %v529_v16, %v1827_v57  ;;  %v1360_v20 = vpop.f32.mrb[11].mxu1  ;;  %1363 = vmatprep.subr.bf16.mxu0 %v1565_v0  ;;  %v1906_v16 = vrot.slane %v107_v15, %v1672_v9 }
 0x21e   :  { %vm531_vm13 = vcmp.ge.f32.partialorder %v530_v19, 1.0  ;;  %v295_v17 = vmul.f32 0.0, %v1906_v16 }
 0x21f   :  { %1364 = vmatpush3.bf16.msra.mxu0 %v1816_v51  ;;  %v1237_v21 = vsel %vm531_vm13, 1.0, %v1565_v0  ;;  %v535_v22 = vsel %vm531_vm13, 0.0, %v530_v19  ;;  %vm467_vm13 = vcmask 189568  }
 0x220   :  { %v534_v23 = vpack.c.bf16 %v1237_v21, %v1237_v21  ;;  %v607_v24 = vmul.f32 %v535_v22, %v1822_v54  ;;  %1377 = vmatprep.subr.bf16.mxu0 %v1565_v0 }
 0x221   :  { %v645_v25 = vpop.f32.mrb[12].mxu1 }
 0x222   :  { %v651_v27 = vadd.f32 %v645_v25, %v607_v24  ;;  %1366 = vmatmul.mubr.msk.bf16.vlgmr.msra.gmra.mrb[12].mxu0 %vm244_vm3, %v534_v23  ;;  %v1375_v28 = vpop.f32.mrb[13].mxu1 }
 0x223   :  { %1378 = vmatpush3.bf16.msra.mxu0 %v1806_v46  ;;  %v648_v29 = vpop.f32.mrb[14].mxu1  ;;  %1381 = vmatprep.mubr.msk.bf16.mxu0 %vm1566_vm0, %v1565_v0 }
 0x224   :  { %v652_v30 = vadd.f32 %v651_v27, %v1827_v57  ;;  %v1376_v31 = vpop.f32.mrb[15].mxu1  ;;  %1379 = vmatprep.subr.bf16.mxu0 %v1565_v0 }
 0x226   :  { %vm653_vm14 = vcmp.ge.f32.partialorder %v652_v30, 1.0 }
 0x227   :  { %1380 = vmatpush3.bf16.msra.mxu0 %v1816_v51  ;;  %v1242_v33 = vsel %vm653_vm14, 1.0, %v1565_v0  ;;  %v657_v34 = vsel %vm653_vm14, 0.0, %v652_v30  ;;  %vm473_vm14 = vcmask 255168  }
 0x228   :  { %v656_v35 = vpack.c.bf16 %v1242_v33, %v1242_v33  ;;  %v727_v36 = vmul.f32 %v657_v34, %v1822_v54  ;;  %1393 = vmatprep.subr.bf16.mxu0 %v1565_v0 }
 0x229   :  { %v765_v38 = vpop.f32.mrb[16].mxu1 }
 0x22a   :  { %v771_v39 = vadd.f32 %v765_v38, %v727_v36  ;;  %1382 = vmatmul.mubr.msk.bf16.vlgmr.msra.gmra.mrb[16].mxu0 %vm244_vm3, %v656_v35  ;;  %v1391_v40 = vpop.f32.mrb[17].mxu1 }
 0x22b   :  { %1394 = vmatpush3.bf16.msra.mxu0 %v1806_v46  ;;  %v768_v41 = vpop.f32.mrb[18].mxu1  ;;  %1397 = vmatprep.mubr.msk.bf16.mxu0 %vm1566_vm0, %v1565_v0 }
 0x22c   :  { %v772_v42 = vadd.f32 %v771_v39, %v1827_v57  ;;  %v1392_v43 = vpop.f32.mrb[19].mxu1  ;;  %1395 = vmatprep.subr.bf16.mxu0 %v1565_v0 }
 0x22e   :  { %vm773_vm15 = vcmp.ge.f32.partialorder %v772_v42, 1.0 }
 0x22f   :  { %1396 = vmatpush3.bf16.msra.mxu0 %v1816_v51  ;;  %v1247_v37 = vsel %vm773_vm15, 1.0, %v1565_v0  ;;  %v777_v44 = vsel %vm773_vm15, 0.0, %v772_v42  ;;  %vm589_vm15 = vcmask 320768  }
 0x230   :  { %v776_v45 = vpack.c.bf16 %v1247_v37, %v1247_v37  ;;  %v850_v47 = vmul.f32 %v777_v44, %v1822_v54  ;;  %1409 = vmatprep.subr.bf16.mxu0 %v1565_v0 }
 0x231   :  { %v888_v48 = vpop.f32.mrb[20].mxu1 }
 0x232   :  { %v894_v49 = vadd.f32 %v888_v48, %v850_v47  ;;  %1398 = vmatmul.mubr.msk.bf16.vlgmr.msra.gmra.mrb[20].mxu0 %vm244_vm3, %v776_v45  ;;  %v1407_v50 = vpop.f32.mrb[21].mxu1 }
 0x233   :  { %1410 = vmatpush3.bf16.msra.mxu0 %v1806_v46  ;;  %v891_v52 = vpop.f32.mrb[22].mxu1  ;;  %1413 = vmatprep.mubr.msk.bf16.mxu0 %vm1566_vm0, %v1565_v0 }
 0x234   :  { %v895_v53 = vadd.f32 %v894_v49, %v1827_v57  ;;  %v1408_v55 = vpop.f32.mrb[23].mxu1  ;;  %1411 = vmatprep.subr.bf16.mxu0 %v1565_v0 }
 0x236   :  { %vm896_vm1 = vcmp.ge.f32.partialorder %v895_v53, 1.0 }
 0x237   :  { %1412 = vmatpush3.bf16.msra.mxu0 %v1816_v51  ;;  %v1252_v56 = vsel %vm896_vm1, 1.0, %v1565_v0  ;;  %v900_v58 = vsel %vm896_vm1, 0.0, %v895_v53  ;;  %vm595_vm1 = vcmask 386368  }
 0x238   :  { %v899_v59 = vpack.c.bf16 %v1252_v56, %v1252_v56  ;;  %v972_v60 = vmul.f32 %v900_v58, %v1822_v54  ;;  %1425 = vmatprep.subr.bf16.mxu0 %v1565_v0 }
 0x239   :  { %v1010_v61 = vpop.f32.mrb[24].mxu1 }
 0x23a   :  { %v1016_v62 = vadd.f32 %v1010_v61, %v972_v60  ;;  %1414 = vmatmul.mubr.msk.bf16.vlgmr.msra.gmra.mrb[24].mxu0 %vm244_vm3, %v899_v59  ;;  %v1423_v63 = vpop.f32.mrb[25].mxu1 }
 0x23b   :  { %1426 = vmatpush3.bf16.msra.mxu0 %v1806_v46  ;;  %v1013_v1 = vpop.f32.mrb[26].mxu1  ;;  %1429 = vmatprep.mubr.msk.bf16.mxu0 %vm1566_vm0, %v1565_v0 }
 0x23c   :  { %v1017_v2 = vadd.f32 %v1016_v62, %v1827_v57  ;;  %v1424_v3 = vpop.f32.mrb[27].mxu1  ;;  %1427 = vmatprep.subr.bf16.mxu0 %v1565_v0 }
 0x23e   :  { %vm1018_vm2 = vcmp.ge.f32.partialorder %v1017_v2, 1.0 }
 0x23f   :  { %1428 = vmatpush3.bf16.msra.mxu0 %v1816_v51  ;;  %v1257_v4 = vsel %vm1018_vm2, 1.0, %v1565_v0  ;;  %v1022_v26 = vsel %vm1018_vm2, 0.0, %v1017_v2  ;;  %vm711_vm2 = vcmask 451968  }
 0x240   :  { %v1021_v5 = vpack.c.bf16 %v1257_v4, %v1257_v4  ;;  %v1093_v6 = vmul.f32 %v1022_v26, %v1822_v54  ;;  %1441 = vmatprep.subr.bf16.mxu0 %v1565_v0 }
 0x241   :  { %v1131_v7 = vpop.f32.mrb[28].mxu1 }
 0x242   :  { %v1137_v8 = vadd.f32 %v1131_v7, %v1093_v6  ;;  %1430 = vmatmul.mubr.msk.bf16.vlgmr.msra.gmra.mrb[28].mxu0 %vm244_vm3, %v1021_v5  ;;  %v1439_v10 = vpop.f32.mrb[29].mxu1 }
 0x243   :  { %1442 = vmatpush3.bf16.msra.mxu0 %v1806_v46  ;;  %v1134_v11 = vpop.f32.mrb[30].mxu1  ;;  %1445 = vmatprep.mubr.msk.bf16.mxu0 %vm1566_vm0, %v1565_v0  ;;  %v169_v46 = vld [vmem:[%s1957_s8] sm:$0x1]  ;;  %vm344_vm0 = vcmask 58368   ;;  %s1568_s8 = smov 24  }
 0x244   :  { %v1138_v12 = vadd.f32 %v1137_v8, %v1827_v57  ;;  %v1440_v13 = vpop.f32.mrb[31].mxu1  ;;  %1443 = vmatprep.subr.bf16.mxu0 %v1565_v0  ;;  %v171_v57 = vmul.f32 %v169_v46, %v1796_v32 }
 0x246   :  { %vm1139_vm4 = vcmp.ge.f32.partialorder %v1138_v12, 1.0  ;;  %v1911_v18 = vrot.slane %v171_v57, %v1672_v9 }
 0x247   :  { %v1262_v54 = vsel %vm1139_vm4, 1.0, %v1565_v0  ;;  %1444 = vmatpush3.bf16.msra.mxu0 %v1816_v51  ;;  %vm717_vm4 = vcmask 517568  }
 0x248   :  { %v1142_v14 = vpack.c.bf16 %v1262_v54, %v1262_v54 }
 0x24a   :  { %1446 = vmatmul.mubr.msk.bf16.vlgmr.msra.gmra.mrb[32].mxu0 %vm244_vm3, %v1142_v14 }
 0x2e5   :  { %v333_v51 = vpop.f32.mrb[4].mxu0 }
 0x2e6   :  { %v339_v19 = vadd.f32 %v333_v51, %v295_v17  ;;  %v1335_v20 = vpop.f32.mrb[5].mxu0 }
 0x2e7   :  { %v336_v21 = vpop.f32.mrb[6].mxu0 }
 0x2e8   :  { %v340_v22 = vadd.f32 %v339_v19, %v1911_v18  ;;  %v1336_v23 = vpop.f32.mrb[7].mxu0 }
 0x2ea   :  { %347 = vrot.lane.b32.xlu0 %v340_v22, %s1567_s5  ;;  %vm341_vm3 = vcmp.ge.f32.partialorder %v340_v22, 1.0 }
 0x2eb   :  { %v1229_v24 = vsel %vm341_vm3, 1.0, %v1565_v0  ;;  %v352_v25 = vsel %vm341_vm3, 0.0, %v340_v22  ;;  %vm837_vm3 = vcmask 648768  }
 0x2ec   :  { %v414_v32 = vmul.f32 %v352_v25, %v1906_v16  ;;  %345 = vst.msk [vmem:[#allocation7] sm:$0x3] %vm344_vm0, %v1229_v24  ;;  %vm831_vm0 = vcmask 583168  }
 0x2ed   :  { %v452_v27 = vpop.f32.mrb[8].mxu0 }
 0x2ee   :  { %v458_v9 = vadd.f32 %v452_v27, %v414_v32  ;;  %v1351_v28 = vpop.f32.mrb[9].mxu0 }
 0x2ef   :  { %v455_v29 = vpop.f32.mrb[10].mxu0 }
 0x2f0   :  { %v459_v30 = vadd.f32 %v458_v9, %v1911_v18  ;;  %v1352_v31 = vpop.f32.mrb[11].mxu0 }
 0x2f2   :  { %470 = vrot.lane.b32.xlu1 %v459_v30, %s1568_s8  ;;  %vm460_vm5 = vcmp.ge.f32.partialorder %v459_v30, 1.0 }
 0x2f3   :  { %v1234_v33 = vsel %vm460_vm5, 1.0, %v1565_v0  ;;  %v475_v34 = vsel %vm460_vm5, 0.0, %v459_v30  ;;  %vm954_vm5 = vcmask 714368  }
 0x2f4   :  { %464 = vrot.lane.b32.xlu0 %v1234_v33, %s1569_s21  ;;  %v536_v35 = vmul.f32 %v475_v34, %v1906_v16 }
 0x2f5   :  { %v574_v36 = vpop.f32.mrb[12].mxu0 }
 0x2f6   :  { %v580_v38 = vadd.f32 %v574_v36, %v536_v35  ;;  %v1367_v39 = vpop.f32.mrb[13].mxu0 }
 0x2f7   :  { %v577_v40 = vpop.f32.mrb[14].mxu0 }
 0x2f8   :  { %v581_v41 = vadd.f32 %v580_v38, %v1911_v18  ;;  %v1368_v42 = vpop.f32.mrb[15].mxu0 }
 0x2fa   :  { %592 = vrot.lane.b32.xlu0 %v581_v41, %s1570_s22  ;;  %vm582_vm6 = vcmp.ge.f32.partialorder %v581_v41, 1.0 }
 0x2fb   :  { %v1239_v43 = vsel %vm582_vm6, 1.0, %v1565_v0  ;;  %v597_v37 = vsel %vm582_vm6, 0.0, %v581_v41  ;;  %vm960_vm6 = vcmask 779968  }
 0x2fc   :  { %586 = vrot.lane.b32.xlu1 %v1239_v43, %s1571_s3  ;;  %v658_v44 = vmul.f32 %v597_v37, %v1906_v16 }
 0x2fd   :  { %v696_v45 = vpop.f32.mrb[16].mxu0 }
 0x2fe   :  { %v702_v47 = vadd.f32 %v696_v45, %v658_v44  ;;  %v1383_v48 = vpop.f32.mrb[17].mxu0 }
 0x2ff   :  { %v699_v49 = vpop.f32.mrb[18].mxu0 }
 0x300   :  { %v703_v50 = vadd.f32 %v702_v47, %v1911_v18  ;;  %v1384_v52 = vpop.f32.mrb[19].mxu0 }
 0x302   :  { %714 = vrot.lane.b32.xlu0 %v703_v50, %s1572_s24  ;;  %vm704_vm7 = vcmp.ge.f32.partialorder %v703_v50, 1.0 }
 0x303   :  { %v1244_v53 = vsel %vm704_vm7, 1.0, %v1565_v0  ;;  %v719_v55 = vsel %vm704_vm7, 0.0, %v703_v50  ;;  %vm1076_vm7 = vcmask 845568  }
 0x304   :  { %708 = vrot.lane.b32.xlu1 %v1244_v53, %s1573_s25  ;;  %v778_v56 = vmul.f32 %v719_v55, %v1906_v16 }
 0x305   :  { %v816_v58 = vpop.f32.mrb[20].mxu0 }
 0x306   :  { %v822_v59 = vadd.f32 %v816_v58, %v778_v56  ;;  %v1399_v60 = vpop.f32.mrb[21].mxu0 }
 0x307   :  { %v819_v61 = vpop.f32.mrb[22].mxu0 }
 0x308   :  { %v823_v62 = vadd.f32 %v822_v59, %v1911_v18  ;;  %v1400_v63 = vpop.f32.mrb[23].mxu0 }
 0x30a   :  { %834 = vrot.lane.b32.xlu0 %v823_v62, %s1574_s1  ;;  %vm824_vm8 = vcmp.ge.f32.partialorder %v823_v62, 1.0 }
 0x30b   :  { %v1249_v1 = vsel %vm824_vm8, 1.0, %v1565_v0  ;;  %v839_v2 = vsel %vm824_vm8, 0.0, %v823_v62  ;;  %vm1082_vm8 = vcmask 911168  }
 0x30c   :  { %828 = vrot.lane.b32.xlu1 %v1249_v1, %s1562_s23  ;;  %v901_v3 = vmul.f32 %v839_v2, %v1906_v16  ;;  %s1577_s23 = smov 104  }
 0x30d   :  { %v939_v4 = vpop.f32.mrb[24].mxu0 }
 0x30e   :  { %v945_v26 = vadd.f32 %v939_v4, %v901_v3  ;;  %v1415_v5 = vpop.f32.mrb[25].mxu0 }
 0x30f   :  { %v942_v6 = vpop.f32.mrb[26].mxu0 }
 0x310   :  { %v946_v7 = vadd.f32 %v945_v26, %v1911_v18  ;;  %v1416_v8 = vpop.f32.mrb[27].mxu0 }
 0x312   :  { %957 = vrot.lane.b32.xlu0 %v946_v7, %s1575_s26  ;;  %vm947_vm9 = vcmp.ge.f32.partialorder %v946_v7, 1.0 }
 0x313   :  { %v1254_v10 = vsel %vm947_vm9, 1.0, %v1565_v0  ;;  %v962_v11 = vsel %vm947_vm9, 0.0, %v946_v7  ;;  %vm1196_vm9 = vcmask 976768  }
 0x314   :  { %951 = vrot.lane.b32.xlu1 %v1254_v10, %s1576_s27  ;;  %v1023_v12 = vmul.f32 %v962_v11, %v1906_v16 }
 0x315   :  { %v1061_v13 = vpop.f32.mrb[28].mxu0 }
 0x316   :  { %v1067_v54 = vadd.f32 %v1061_v13, %v1023_v12  ;;  %v1431_v14 = vpop.f32.mrb[29].mxu0 }
 0x317   :  { %v1064_v15 = vpop.f32.mrb[30].mxu0 }
 0x318   :  { %v1068_v46 = vadd.f32 %v1067_v54, %v1911_v18  ;;  %v1432_v57 = vpop.f32.mrb[31].mxu0 }
 0x31a   :  { %1079 = vrot.lane.b32.xlu0 %v1068_v46, %s1577_s23  ;;  %vm1069_vm10 = vcmp.ge.f32.partialorder %v1068_v46, 1.0 }
 0x31b   :  { %v1259_v17 = vsel %vm1069_vm10, 1.0, %v1565_v0  ;;  %v1084_v51 = vsel %vm1069_vm10, 0.0, %v1068_v46  ;;  %vm1202_vm10 = vcmask 1042368  }
 0x31c   :  { %1073 = vrot.lane.b32.xlu1 %v1259_v17, %s1578_s6  ;;  %v1143_v19 = vmul.f32 %v1084_v51, %v1906_v16 }
 0x31d   :  { %v1181_v20 = vpop.f32.mrb[32].mxu0 }
 0x31e   :  { %v1187_v21 = vadd.f32 %v1181_v20, %v1143_v19  ;;  %v1447_v22 = vpop.f32.mrb[33].mxu0 }
 0x31f   :  { %v1184_v23 = vpop.f32.mrb[34].mxu0 }
 0x320   :  { %v1188_v24 = vadd.f32 %v1187_v21, %v1911_v18  ;;  %v1448_v25 = vpop.f32.mrb[35].mxu0 }
 0x322   :  { %1199 = vrot.lane.b32.xlu0 %v1188_v24, %s1579_s28  ;;  %vm1189_vm11 = vcmp.ge.f32.partialorder %v1188_v24, 1.0 }
 0x323   :  { %v1264_v32 = vsel %vm1189_vm11, 1.0, %v1565_v0 }
 0x324   :  { %1193 = vrot.lane.b32.xlu1 %v1264_v32, %s1580_s29 }
 0x35c   :  { %v348_v27 = vpop.permute.xlu0 %347 }
 0x35d   :  { %351 = vst.msk [vmem:[#allocation7] sm:$0x3] %vm350_vm12, %v348_v27 }
 0x364   :  { %v471_v9 = vpop.permute.xlu1 %470 }
 0x366   :  { %v465_v16 = vpop.permute.xlu0 %464 }
 0x367   :  { %468 = vst.msk [vmem:[#allocation7] sm:$0x3] %vm467_vm13, %v465_v16 }
 0x368   :  { %474 = vst.msk [vmem:[#allocation7] sm:$0x3] %vm473_vm14, %v471_v9 }
 0x36c   :  { %v593_v28 = vpop.permute.xlu0 %592 }
 0x36e   :  { %v587_v18 = vpop.permute.xlu1 %586 }
 0x36f   :  { %590 = vst.msk [vmem:[#allocation7] sm:$0x3] %vm589_vm15, %v587_v18 }
 0x370   :  { %596 = vst.msk [vmem:[#allocation7] sm:$0x3] %vm595_vm1, %v593_v28 }
 0x374   :  { %v715_v29 = vpop.permute.xlu0 %714 }
 0x376   :  { %v709_v0 = vpop.permute.xlu1 %708 }
 0x377   :  { %712 = vst.msk [vmem:[#allocation7] sm:$0x3] %vm711_vm2, %v709_v0 }
 0x378   :  { %718 = vst.msk [vmem:[#allocation7] sm:$0x3] %vm717_vm4, %v715_v29 }
 0x37c   :  { %v835_v31 = vpop.permute.xlu0 %834 }
 0x37e   :  { %v829_v30 = vpop.permute.xlu1 %828 }
 0x37f   :  { %832 = vst.msk [vmem:[#allocation7] sm:$0x3] %vm831_vm0, %v829_v30 }
 0x380   :  { %838 = vst.msk [vmem:[#allocation7] sm:$0x3] %vm837_vm3, %v835_v31 }
 0x384   :  { %v958_v34 = vpop.permute.xlu0 %957 }
 0x386   :  { %v952_v33 = vpop.permute.xlu1 %951 }
 0x387   :  { %955 = vst.msk [vmem:[#allocation7] sm:$0x3] %vm954_vm5, %v952_v33 }
 0x388   :  { %961 = vst.msk [vmem:[#allocation7] sm:$0x3] %vm960_vm6, %v958_v34 }
 0x38c   :  { %v1080_v36 = vpop.permute.xlu0 %1079 }
 0x38e   :  { %v1074_v35 = vpop.permute.xlu1 %1073 }
 0x38f   :  { %1077 = vst.msk [vmem:[#allocation7] sm:$0x3] %vm1076_vm7, %v1074_v35 }
 0x390   :  { %1083 = vst.msk [vmem:[#allocation7] sm:$0x3] %vm1082_vm8, %v1080_v36 }
 0x394   :  { %v1200_v39 = vpop.permute.xlu0 %1199 }
 0x396   :  { %v1194_v38 = vpop.permute.xlu1 %1193 }
 0x397   :  { %1197 = vst.msk [vmem:[#allocation7] sm:$0x3] %vm1196_vm9, %v1194_v38 }
 0x398   :  { %1203 = vst.msk [vmem:[#allocation7] sm:$0x3] %vm1202_vm10, %v1200_v39 }
 0x399   :  { %1544 = shalt.err (!%p1541_p6)
}
 0x39a   :  { %s1545_s4 = scalar_lea.hbm %s1959_s10, 32 }
 0x39b   :  { %p1546_p7 = scmp.ne.s32.totalorder %s1959_s10, %s1545_s4  ;;  %p1549_p8 = scmp.lt.u32.totalorder %s1545_s4, %s1959_s10 }
 0x39d   :  { %p1551_p9 = pnand %p1549_p8, %p1546_p7 }
 0x39f   :  { %1554 = shalt.err (!%p1551_p9)
}
 0x3a0   :  { %1213 = dma.vmem_to_hbm [thread:$0]  %s1211_s11, 32, %s1959_s10, [#allocation4]  }
 0x3a1   :  { %1559 = dma.done.wait [#allocation4], 32  }
 0x3a2   :  { %1560 = vsyncadd [#allocation4], 4294967264 }
 0x3a3   :  { %1217 = vsyncpa [#allocation3], 1 }
 0x3a4   :  { %1218 = vsyncpa [#allocation6], 1 }
 0x3a5   :  { %1219 = vsyncpa [#allocation4], 1 }

</bundles_post_ra>
